<compile_context>
chip_gen: v7x
topology: tpu7x:2x2x1
jax: 0.10.0
libtpu: 0.0.40
codegen_flags: <defaults>
</compile_context>

<pallas_src>
import math
import functools

import jax
import jax.numpy as jnp
from jax.experimental import pallas as pl
from jax.experimental.pallas import tpu as pltpu


# ------------------------------ small helpers -------------------------------

def _ceil_to(v, m):
    return (v + m - 1) // m * m


def _ln(x, g, b, eps):
    mu = jnp.mean(x, axis=-1, keepdims=True)
    var = jnp.mean(jnp.square(x - mu), axis=-1, keepdims=True)
    return (x - mu) * jax.lax.rsqrt(var + eps) * g + b


def _gelu_exact(x):
    # nn.GELU default (erf formulation)
    return 0.5 * x * (1.0 + jax.lax.erf(x * (1.0 / math.sqrt(2.0))))


# ------------------------------ fused kernel --------------------------------

def _lvvit_fused_kernel(
        patches_ref, addemb_ref, pw_ref,
        ln1g_ref, ln1b_ref, wq_ref, wk_ref, wv_ref, wproj_ref, bproj_ref,
        ln2g_ref, ln2b_ref, w1_ref, b1_ref, w2_ref, b2_ref,
        ng_ref, nb_ref, hw_ref, hb_ref,
        o_ref,
        *, depth, num_heads, head_dim, scale, inv_skip_lam, eps,
        n_tokens, batch_tile, seq_pad):
    """grid = (batch_tiles,).  One invocation = patch-embed + ALL `depth`
    transformer blocks + final LN + classifier head for a tile of `batch_tile`
    images.  Per-depth weights are full depth-stacked blocks (constant
    index_map) so they are DMA'd from HBM only once."""
    Bt, S_pad = batch_tile, seq_pad
    H, dh = num_heads, head_dim
    HD = H * dh
    M = Bt * S_pad
    D = addemb_ref.shape[-1]

    # ---- patch embedding; conv bias / cls token / pos-emb folded in addemb --
    patches = patches_ref[...].reshape(M, -1)                       # (M, P) bf16
    tok = jnp.dot(patches, pw_ref[...],
                  preferred_element_type=jnp.float32)               # (M, D) f32
    x = (tok.reshape(Bt, S_pad, D) + addemb_ref[...][None, :, :]).reshape(M, D)

    # padded keys (positions > n_tokens) are masked out of attention; padded
    # query rows / padded batch rows carry benign values that never reach the
    # logits (only the cls row of real batch elements is read at the end).
    key_ok = jax.lax.broadcasted_iota(jnp.int32, (1, S_pad, S_pad), 2) <= n_tokens

    def split_heads(t):                     # (M, HD) f32 -> (H*Bt, S_pad, dh)
        t = t.reshape(Bt, S_pad, HD)
        return jnp.concatenate(
            [t[:, :, i * dh:(i + 1) * dh] for i in range(H)], axis=0)

    def merge_heads(t):                     # (H*Bt, S_pad, dh) -> (M, HD)
        return jnp.concatenate(
            [t[i * Bt:(i + 1) * Bt] for i in range(H)], axis=-1).reshape(M, HD)

    def block(d, x):
        # --------------------------- attention branch -----------------------
        h1 = _ln(x, ln1g_ref[d], ln1b_ref[d], eps)
        hb = h1.astype(jnp.bfloat16)                     # cast at dot boundary
        q = jnp.dot(hb, wq_ref[d], preferred_element_type=jnp.float32)
        k = jnp.dot(hb, wk_ref[d], preferred_element_type=jnp.float32)
        v = jnp.dot(hb, wv_ref[d], preferred_element_type=jnp.float32)
        q3, k3, v3 = split_heads(q), split_heads(k), split_heads(v)   # f32

        s = jnp.einsum('bqd,bkd->bqk', q3.astype(jnp.bfloat16),
                       k3.astype(jnp.bfloat16),
                       preferred_element_type=jnp.float32) * scale
        s = jnp.where(key_ok, s, -1e30)
        s = s - jnp.max(s, axis=-1, keepdims=True)
        p = jnp.exp(s)
        p = p * pl.reciprocal(jnp.sum(p, axis=-1, keepdims=True), approx=True)
        ctx = jnp.einsum('bqk,bkd->bqd', p.astype(jnp.bfloat16),
                         v3.astype(jnp.bfloat16),
                         preferred_element_type=jnp.float32)
        ctx = merge_heads(ctx)                                      # (M, HD)
        proj = jnp.dot(ctx.astype(jnp.bfloat16), wproj_ref[d],
                       preferred_element_type=jnp.float32) + bproj_ref[d]
        x = x + proj * inv_skip_lam

        # ------------------------------ MLP branch ---------------------------
        h2 = _ln(x, ln2g_ref[d], ln2b_ref[d], eps)
        z = jnp.dot(h2.astype(jnp.bfloat16), w1_ref[d],
                    preferred_element_type=jnp.float32) + b1_ref[d]
        z = _gelu_exact(z)
        z = jnp.dot(z.astype(jnp.bfloat16), w2_ref[d],
                    preferred_element_type=jnp.float32) + b2_ref[d]
        return x + z * inv_skip_lam

    x = jax.lax.fori_loop(0, depth, block, x)

    # ---------- final LayerNorm on the cls rows + classifier head -----------
    cls = x.reshape(Bt, S_pad, D)[:, :1, :].reshape(Bt, D)
    c = _ln(cls, ng_ref[...], nb_ref[...], eps)
    o_ref[...] = jnp.dot(c.astype(jnp.bfloat16), hw_ref[...],
                         preferred_element_type=jnp.float32) + hb_ref[...]


# ------------------------------- glue (JAX) ----------------------------------

def bilinear_resize_align_corners(x, out_h, out_w):
    """F.interpolate(x, (out_h, out_w), mode='bilinear', align_corners=True)."""
    B, C, H, W = x.shape
    ys = (jnp.linspace(0.0, float(H - 1), out_h)
          if out_h > 1 else jnp.zeros((1,), jnp.float32))
    xs = (jnp.linspace(0.0, float(W - 1), out_w)
          if out_w > 1 else jnp.zeros((1,), jnp.float32))
    y0 = jnp.floor(ys).astype(jnp.int32)
    y1 = jnp.minimum(y0 + 1, H - 1)
    x0 = jnp.floor(xs).astype(jnp.int32)
    x1 = jnp.minimum(x0 + 1, W - 1)
    wy = (ys - y0.astype(jnp.float32))[None, None, :, None]
    wx = (xs - x0.astype(jnp.float32))[None, None, None, :]

    def g(yi, xi):
        return x[:, :, yi, :][:, :, :, xi]

    top = g(y0, x0) * (1.0 - wx) + g(y0, x1) * wx
    bot = g(y1, x0) * (1.0 - wx) + g(y1, x1) * wx
    return top * (1.0 - wy) + bot * wy


def init_params(key, cfg, num_patches_list):
    D = cfg['embed_dim']
    depth = cfg['depth']
    H = cfg['num_heads']
    dh = cfg['head_dim']
    HD = H * dh
    hidden = int(D * cfg['mlp_ratio'])
    C = cfg['num_classes']
    C_pad = _ceil_to(max(C, 1), 128)
    ps = cfg['patch_size']
    Cin = cfg['in_chans']
    P = Cin * ps * ps

    ks = iter(jax.random.split(key, 12 + len(num_patches_list)))

    def tn(k, shape):
        return 0.02 * jax.random.truncated_normal(k, -2.0, 2.0, shape, jnp.float32)

    p = {}
    # PatchEmbedNaive: Conv2d(in_chans, D, k=stride=patch_size) in matmul form
    p['patch_w'] = tn(next(ks), (P, D)).astype(jnp.bfloat16)
    p['patch_b'] = jnp.zeros((1, D), jnp.float32)
    p['cls_token'] = tn(next(ks), (1, 1, D))
    p['pos_embed_list'] = [tn(next(ks), (1, n + 1, D)) for n in num_patches_list]
    # transformer blocks, stacked along a leading depth axis; q/k/v pre-split
    p['ln1_g'] = jnp.ones((depth, 1, D), jnp.float32)
    p['ln1_b'] = jnp.zeros((depth, 1, D), jnp.float32)
    p['w_q'] = tn(next(ks), (depth, D, HD)).astype(jnp.bfloat16)   # qkv_bias=False
    p['w_k'] = tn(next(ks), (depth, D, HD)).astype(jnp.bfloat16)
    p['w_v'] = tn(next(ks), (depth, D, HD)).astype(jnp.bfloat16)
    p['w_proj'] = tn(next(ks), (depth, HD, D)).astype(jnp.bfloat16)
    p['b_proj'] = jnp.zeros((depth, 1, D), jnp.float32)
    p['ln2_g'] = jnp.ones((depth, 1, D), jnp.float32)
    p['ln2_b'] = jnp.zeros((depth, 1, D), jnp.float32)
    p['w_fc1'] = tn(next(ks), (depth, D, hidden)).astype(jnp.bfloat16)
    p['b_fc1'] = jnp.zeros((depth, 1, hidden), jnp.float32)
    p['w_fc2'] = tn(next(ks), (depth, hidden, D)).astype(jnp.bfloat16)
    p['b_fc2'] = jnp.zeros((depth, 1, D), jnp.float32)
    p['norm_g'] = jnp.ones((1, D), jnp.float32)
    p['norm_b'] = jnp.zeros((1, D), jnp.float32)
    # classifier head, padded to 128 lanes (lane-dense output store)
    hw = tn(next(ks), (D, C))
    p['head_w'] = jnp.pad(hw, ((0, 0), (0, C_pad - C))).astype(jnp.bfloat16)
    p['head_b'] = jnp.zeros((1, C_pad), jnp.float32)
    return p


def make_forward(cfg):
    ps = cfg['patch_size']
    D = cfg['embed_dim']
    depth = cfg['depth']
    H = cfg['num_heads']
    dh = cfg['head_dim']
    HD = H * dh
    hidden = int(D * cfg['mlp_ratio'])
    C = cfg['num_classes']
    scale = cfg['qk_scale'] if cfg.get('qk_scale') is not None else dh ** -0.5
    inv_skip_lam = 1.0 / cfg['skip_lam']
    img_size_list = tuple(cfg['img_size_list'])

    @functools.partial(jax.jit, static_argnames=('img_size', 'keep_ratio'))
    def forward(params, x, img_size, keep_ratio=1.0):
        # TODO(synk): keep_ratio < 1 token pruning (layers 3,6,9) is not defined
        #             in the provided source; exact only for keep_ratio == 1.
        del keep_ratio
        x = x.astype(jnp.float32)
        B, Cin, Hh, Ww = x.shape
        if (Hh, Ww) != (img_size, img_size):        # identity resize is skipped
            x = bilinear_resize_align_corners(x, img_size, img_size)
        hp = wp = img_size // ps
        n_tok = hp * wp
        S = n_tok + 1
        S_pad = _ceil_to(S, 8)
        P = Cin * ps * ps
        C_pad = params['head_w'].shape[1]

        # batch tiling: process Bt images per grid step so matmul M = Bt*S_pad
        # amortizes per-step overhead and feeds the MXU; batch axis stays
        # "parallel" so multiple TensorCores (megacore / v7x) can split tiles.
        Bt = min(B, 8)
        B_pad = _ceil_to(B, Bt)
        n_tiles = B_pad // Bt

        # NCHW -> (B_pad, S_pad, P); row 0 reserved for the cls token, tail and
        # extra batch rows zero-padded.
        patches = x.reshape(B, Cin, hp, ps, wp, ps).transpose(0, 2, 4, 1, 3, 5)
        patches = patches.reshape(B, n_tok, P)
        patches = jnp.pad(patches, ((0, B_pad - B), (1, S_pad - S), (0, 0)))
        patches = patches.astype(jnp.bfloat16)

        # additive embedding: row0 = cls + pos[0]; rows 1..n_tok = pos + conv
        # bias (folded here so the kernel needs no row masking); pad rows = 0.
        pos = params['pos_embed_list'][img_size_list.index(img_size)][0]  # (S,D)
        add_emb = jnp.concatenate(
            [pos[:1] + params['cls_token'][0],
             pos[1:] + params['patch_b']], axis=0)
        add_emb = jnp.pad(add_emb, ((0, S_pad - S), (0, 0)))

        kernel = functools.partial(
            _lvvit_fused_kernel, depth=depth, num_heads=H, head_dim=dh,
            scale=scale, inv_skip_lam=inv_skip_lam, eps=1e-5,
            n_tokens=n_tok, batch_tile=Bt, seq_pad=S_pad)

        logits = pl.pallas_call(
            kernel,
            out_shape=jax.ShapeDtypeStruct((B_pad, C_pad), jnp.float32),
            grid=(n_tiles,),
            in_specs=[
                pl.BlockSpec((Bt, S_pad, P), lambda b: (b, 0, 0)),      # patches
                pl.BlockSpec((S_pad, D), lambda b: (0, 0)),             # cls+pos+bias
                pl.BlockSpec((P, D), lambda b: (0, 0)),                 # patch_w
                pl.BlockSpec((depth, 1, D), lambda b: (0, 0, 0)),       # ln1_g
                pl.BlockSpec((depth, 1, D), lambda b: (0, 0, 0)),       # ln1_b
                pl.BlockSpec((depth, D, HD), lambda b: (0, 0, 0)),      # w_q
                pl.BlockSpec((depth, D, HD), lambda b: (0, 0, 0)),      # w_k
                pl.BlockSpec((depth, D, HD), lambda b: (0, 0, 0)),      # w_v
                pl.BlockSpec((depth, HD, D), lambda b: (0, 0, 0)),      # w_proj
                pl.BlockSpec((depth, 1, D), lambda b: (0, 0, 0)),       # b_proj
                pl.BlockSpec((depth, 1, D), lambda b: (0, 0, 0)),       # ln2_g
                pl.BlockSpec((depth, 1, D), lambda b: (0, 0, 0)),       # ln2_b
                pl.BlockSpec((depth, D, hidden), lambda b: (0, 0, 0)),  # w_fc1
                pl.BlockSpec((depth, 1, hidden), lambda b: (0, 0, 0)),  # b_fc1
                pl.BlockSpec((depth, hidden, D), lambda b: (0, 0, 0)),  # w_fc2
                pl.BlockSpec((depth, 1, D), lambda b: (0, 0, 0)),       # b_fc2
                pl.BlockSpec((1, D), lambda b: (0, 0)),                 # norm_g
                pl.BlockSpec((1, D), lambda b: (0, 0)),                 # norm_b
                pl.BlockSpec((D, C_pad), lambda b: (0, 0)),             # head_w
                pl.BlockSpec((1, C_pad), lambda b: (0, 0)),             # head_b
            ],
            out_specs=pl.BlockSpec((Bt, C_pad), lambda b: (b, 0)),
            compiler_params=pltpu.CompilerParams(
                dimension_semantics=("parallel",)),
        )(patches, add_emb, params['patch_w'],
          params['ln1_g'], params['ln1_b'],
          params['w_q'], params['w_k'], params['w_v'],
          params['w_proj'], params['b_proj'],
          params['ln2_g'], params['ln2_b'],
          params['w_fc1'], params['b_fc1'], params['w_fc2'], params['b_fc2'],
          params['norm_g'], params['norm_b'],
          params['head_w'], params['head_b'])

        # drop padded batch rows and padded classes -> (B, num_classes)
        return logits[:B, :C]

    return forward


# ----------------------------------- main ------------------------------------

if __name__ == "__main__":
    cfg = dict(img_size_list=[16], patch_size=4, in_chans=3, num_classes=10,
               embed_dim=32, depth=4, num_heads=4, mlp_ratio=4.0,
               qk_scale=None, skip_lam=1.0)
    cfg['head_dim'] = cfg['embed_dim'] // cfg['num_heads']
    num_patches_list = [(s // cfg['patch_size']) ** 2 for s in cfg['img_size_list']]

    key = jax.random.PRNGKey(0)
    kp, kx = jax.random.split(key)
    params = init_params(kp, cfg, num_patches_list)
    x = jax.random.normal(kx, (2, cfg['in_chans'], 16, 16), dtype=jnp.float32)

    forward = make_forward(cfg)
    out = forward(params, x, img_size=16, keep_ratio=1.0)
    out = jax.block_until_ready(out)

    assert out.shape == (2, cfg['num_classes']), out.shape
    assert out.dtype == jnp.float32
    assert bool(jnp.all(jnp.isfinite(out)))
    print("KERNEL_OK")
</pallas_src>

<mosaic_0001>
module attributes {stable_mosaic.version = 11 : i64} {
  func.func @_lvvit_fused_kernel(%arg0: i32, %arg1: memref<2x24x48xbf16, #tpu.memory_space<vmem>>, %arg2: memref<24x32xf32, #tpu.memory_space<vmem>>, %arg3: memref<48x32xbf16, #tpu.memory_space<vmem>>, %arg4: memref<4x1x32xf32, #tpu.memory_space<vmem>>, %arg5: memref<4x1x32xf32, #tpu.memory_space<vmem>>, %arg6: memref<4x32x32xbf16, #tpu.memory_space<vmem>>, %arg7: memref<4x32x32xbf16, #tpu.memory_space<vmem>>, %arg8: memref<4x32x32xbf16, #tpu.memory_space<vmem>>, %arg9: memref<4x32x32xbf16, #tpu.memory_space<vmem>>, %arg10: memref<4x1x32xf32, #tpu.memory_space<vmem>>, %arg11: memref<4x1x32xf32, #tpu.memory_space<vmem>>, %arg12: memref<4x1x32xf32, #tpu.memory_space<vmem>>, %arg13: memref<4x32x128xbf16, #tpu.memory_space<vmem>>, %arg14: memref<4x1x128xf32, #tpu.memory_space<vmem>>, %arg15: memref<4x128x32xbf16, #tpu.memory_space<vmem>>, %arg16: memref<4x1x32xf32, #tpu.memory_space<vmem>>, %arg17: memref<1x32xf32, #tpu.memory_space<vmem>>, %arg18: memref<1x32xf32, #tpu.memory_space<vmem>>, %arg19: memref<32x128xbf16, #tpu.memory_space<vmem>>, %arg20: memref<1x128xf32, #tpu.memory_space<vmem>>, %arg21: memref<2x128xf32, #tpu.memory_space<vmem>>) attributes {dimension_semantics = [#tpu.dimension_semantics<parallel>], iteration_bounds = array<i64: 1>, scalar_prefetch = 0 : i64, scratch_operands = 0 : i64, tpu.core_type = #tpu.core_type<tc>, window_params = [{transform_indices = @transform_0, window_bounds = array<i64: 2, 24, 48>}, {pipeline_mode = #tpu.pipeline_mode<synchronous>, transform_indices = @transform_1, window_bounds = array<i64: 24, 32>}, {pipeline_mode = #tpu.pipeline_mode<synchronous>, transform_indices = @transform_2, window_bounds = array<i64: 48, 32>}, {pipeline_mode = #tpu.pipeline_mode<synchronous>, transform_indices = @transform_3, window_bounds = array<i64: 4, 1, 32>}, {pipeline_mode = #tpu.pipeline_mode<synchronous>, transform_indices = @transform_4, window_bounds = array<i64: 4, 1, 32>}, {pipeline_mode = #tpu.pipeline_mode<synchronous>, transform_indices = @transform_5, window_bounds = array<i64: 4, 32, 32>}, {pipeline_mode = #tpu.pipeline_mode<synchronous>, transform_indices = @transform_6, window_bounds = array<i64: 4, 32, 32>}, {pipeline_mode = #tpu.pipeline_mode<synchronous>, transform_indices = @transform_7, window_bounds = array<i64: 4, 32, 32>}, {pipeline_mode = #tpu.pipeline_mode<synchronous>, transform_indices = @transform_8, window_bounds = array<i64: 4, 32, 32>}, {pipeline_mode = #tpu.pipeline_mode<synchronous>, transform_indices = @transform_9, window_bounds = array<i64: 4, 1, 32>}, {pipeline_mode = #tpu.pipeline_mode<synchronous>, transform_indices = @transform_10, window_bounds = array<i64: 4, 1, 32>}, {pipeline_mode = #tpu.pipeline_mode<synchronous>, transform_indices = @transform_11, window_bounds = array<i64: 4, 1, 32>}, {pipeline_mode = #tpu.pipeline_mode<synchronous>, transform_indices = @transform_12, window_bounds = array<i64: 4, 32, 128>}, {pipeline_mode = #tpu.pipeline_mode<synchronous>, transform_indices = @transform_13, window_bounds = array<i64: 4, 1, 128>}, {pipeline_mode = #tpu.pipeline_mode<synchronous>, transform_indices = @transform_14, window_bounds = array<i64: 4, 128, 32>}, {pipeline_mode = #tpu.pipeline_mode<synchronous>, transform_indices = @transform_15, window_bounds = array<i64: 4, 1, 32>}, {pipeline_mode = #tpu.pipeline_mode<synchronous>, transform_indices = @transform_16, window_bounds = array<i64: 1, 32>}, {pipeline_mode = #tpu.pipeline_mode<synchronous>, transform_indices = @transform_17, window_bounds = array<i64: 1, 32>}, {pipeline_mode = #tpu.pipeline_mode<synchronous>, transform_indices = @transform_18, window_bounds = array<i64: 32, 128>}, {pipeline_mode = #tpu.pipeline_mode<synchronous>, transform_indices = @transform_19, window_bounds = array<i64: 1, 128>}, {transform_indices = @transform_20, window_bounds = array<i64: 2, 128>}]} {
    %c0 = arith.constant 0 : index
    %c0_0 = arith.constant 0 : index
    %c0_1 = arith.constant 0 : index
    %0 = vector.load %arg1[%c0, %c0_0, %c0_1] : memref<2x24x48xbf16, #tpu.memory_space<vmem>>, vector<2x24x48xbf16>
    %1 = vector.shape_cast %0 : vector<2x24x48xbf16> to vector<48x48xbf16>
    %c0_2 = arith.constant 0 : index
    %c0_3 = arith.constant 0 : index
    %2 = vector.load %arg3[%c0_2, %c0_3] : memref<48x32xbf16, #tpu.memory_space<vmem>>, vector<48x32xbf16>
    %cst = arith.constant dense<0.000000e+00> : vector<48x32xf32>
    %3 = tpu.matmul %1, %2, %cst {dimension_numbers = #tpu.dot_dimension_numbers<[1], [0], [0], [1], [0, 0, 1, 1], [], []>} : vector<48x48xbf16>, vector<48x32xbf16>, vector<48x32xf32> -> vector<48x32xf32>
    %4 = vector.shape_cast %3 : vector<48x32xf32> to vector<2x24x32xf32>
    %c0_4 = arith.constant 0 : index
    %c0_5 = arith.constant 0 : index
    %5 = vector.load %arg2[%c0_4, %c0_5] : memref<24x32xf32, #tpu.memory_space<vmem>>, vector<24x32xf32>
    %6 = vector.shape_cast %5 : vector<24x32xf32> to vector<1x24x32xf32>
    %7 = vector.broadcast %6 : vector<1x24x32xf32> to vector<2x24x32xf32>
    %8 = arith.addf %4, %7 : vector<2x24x32xf32>
    %9 = vector.shape_cast %8 : vector<2x24x32xf32> to vector<48x32xf32>
    %10 = tpu.iota {dimensions = array<i32: 2>} : vector<1x24x24xi32>
    %c16_i32 = arith.constant 16 : i32
    %11 = vector.broadcast %c16_i32 : i32 to vector<1x24x24xi32>
    %12 = arith.cmpi sle, %10, %11 : vector<1x24x24xi32>
    %c0_i32 = arith.constant 0 : i32
    %c4_i32 = arith.constant 4 : i32
    %13 = arith.addi %c0_i32, %c4_i32 : i32
    %c1_i32 = arith.constant 1 : i32
    %14 = scf.for %arg22 = %c0_i32 to %13 step %c1_i32 iter_args(%arg23 = %9) -> (vector<48x32xf32>)  : i32 {
      %49 = arith.index_cast %arg22 : i32 to index
      %c0_23 = arith.constant 0 : index
      %c0_24 = arith.constant 0 : index
      %50 = vector.load %arg4[%49, %c0_23, %c0_24] : memref<4x1x32xf32, #tpu.memory_space<vmem>>, vector<1x1x32xf32>
      %51 = vector.shape_cast %50 : vector<1x1x32xf32> to vector<1x32xf32>
      %52 = arith.index_cast %arg22 : i32 to index
      %c0_25 = arith.constant 0 : index
      %c0_26 = arith.constant 0 : index
      %53 = vector.load %arg5[%52, %c0_25, %c0_26] : memref<4x1x32xf32, #tpu.memory_space<vmem>>, vector<1x1x32xf32>
      %54 = vector.shape_cast %53 : vector<1x1x32xf32> to vector<1x32xf32>
      %cst_27 = arith.constant dense<0.000000e+00> : vector<48xf32>
      %55 = vector.multi_reduction <add>, %arg23, %cst_27 [1] : vector<48x32xf32> to vector<48xf32>
      %56 = vector.shape_cast %55 : vector<48xf32> to vector<48x1xf32>
      %cst_28 = arith.constant 3.200000e+01 : f32
      %57 = vector.broadcast %cst_28 : f32 to vector<48x1xf32>
      %58 = arith.divf %56, %57 : vector<48x1xf32>
      %59 = vector.broadcast %58 : vector<48x1xf32> to vector<48x32xf32>
      %60 = arith.subf %arg23, %59 : vector<48x32xf32>
      %61 = arith.mulf %60, %60 : vector<48x32xf32>
      %cst_29 = arith.constant dense<0.000000e+00> : vector<48xf32>
      %62 = vector.multi_reduction <add>, %61, %cst_29 [1] : vector<48x32xf32> to vector<48xf32>
      %63 = vector.shape_cast %62 : vector<48xf32> to vector<48x1xf32>
      %cst_30 = arith.constant 3.200000e+01 : f32
      %64 = vector.broadcast %cst_30 : f32 to vector<48x1xf32>
      %65 = arith.divf %63, %64 : vector<48x1xf32>
      %66 = vector.broadcast %58 : vector<48x1xf32> to vector<48x32xf32>
      %67 = arith.subf %arg23, %66 : vector<48x32xf32>
      %cst_31 = arith.constant 9.99999974E-6 : f32
      %68 = vector.broadcast %cst_31 : f32 to vector<48x1xf32>
      %69 = arith.addf %65, %68 : vector<48x1xf32>
      %70 = math.rsqrt %69 : vector<48x1xf32>
      %71 = vector.broadcast %70 : vector<48x1xf32> to vector<48x32xf32>
      %72 = arith.mulf %67, %71 : vector<48x32xf32>
      %73 = vector.broadcast %51 : vector<1x32xf32> to vector<48x32xf32>
      %74 = arith.mulf %72, %73 : vector<48x32xf32>
      %75 = vector.broadcast %54 : vector<1x32xf32> to vector<48x32xf32>
      %76 = arith.addf %74, %75 : vector<48x32xf32>
      %77 = arith.truncf %76 : vector<48x32xf32> to vector<48x32xbf16>
      %78 = arith.index_cast %arg22 : i32 to index
      %c0_32 = arith.constant 0 : index
      %c0_33 = arith.constant 0 : index
      %79 = vector.load %arg6[%78, %c0_32, %c0_33] : memref<4x32x32xbf16, #tpu.memory_space<vmem>>, vector<1x32x32xbf16>
      %80 = vector.shape_cast %79 : vector<1x32x32xbf16> to vector<32x32xbf16>
      %cst_34 = arith.constant dense<0.000000e+00> : vector<48x32xf32>
      %81 = tpu.matmul %77, %80, %cst_34 {dimension_numbers = #tpu.dot_dimension_numbers<[1], [0], [0], [1], [0, 0, 1, 1], [], []>} : vector<48x32xbf16>, vector<32x32xbf16>, vector<48x32xf32> -> vector<48x32xf32>
      %82 = arith.index_cast %arg22 : i32 to index
      %c0_35 = arith.constant 0 : index
      %c0_36 = arith.constant 0 : index
      %83 = vector.load %arg7[%82, %c0_35, %c0_36] : memref<4x32x32xbf16, #tpu.memory_space<vmem>>, vector<1x32x32xbf16>
      %84 = vector.shape_cast %83 : vector<1x32x32xbf16> to vector<32x32xbf16>
      %cst_37 = arith.constant dense<0.000000e+00> : vector<48x32xf32>
      %85 = tpu.matmul %77, %84, %cst_37 {dimension_numbers = #tpu.dot_dimension_numbers<[1], [0], [0], [1], [0, 0, 1, 1], [], []>} : vector<48x32xbf16>, vector<32x32xbf16>, vector<48x32xf32> -> vector<48x32xf32>
      %86 = arith.index_cast %arg22 : i32 to index
      %c0_38 = arith.constant 0 : index
      %c0_39 = arith.constant 0 : index
      %87 = vector.load %arg8[%86, %c0_38, %c0_39] : memref<4x32x32xbf16, #tpu.memory_space<vmem>>, vector<1x32x32xbf16>
      %88 = vector.shape_cast %87 : vector<1x32x32xbf16> to vector<32x32xbf16>
      %cst_40 = arith.constant dense<0.000000e+00> : vector<48x32xf32>
      %89 = tpu.matmul %77, %88, %cst_40 {dimension_numbers = #tpu.dot_dimension_numbers<[1], [0], [0], [1], [0, 0, 1, 1], [], []>} : vector<48x32xbf16>, vector<32x32xbf16>, vector<48x32xf32> -> vector<48x32xf32>
      %90 = vector.shape_cast %81 : vector<48x32xf32> to vector<2x24x32xf32>
      %91 = vector.extract_strided_slice %90 {offsets = [0, 0, 0], sizes = [2, 24, 8], strides = [1, 1, 1]} : vector<2x24x32xf32> to vector<2x24x8xf32>
      %92 = vector.extract_strided_slice %90 {offsets = [0, 0, 8], sizes = [2, 24, 8], strides = [1, 1, 1]} : vector<2x24x32xf32> to vector<2x24x8xf32>
      %93 = vector.extract_strided_slice %90 {offsets = [0, 0, 16], sizes = [2, 24, 8], strides = [1, 1, 1]} : vector<2x24x32xf32> to vector<2x24x8xf32>
      %94 = vector.extract_strided_slice %90 {offsets = [0, 0, 24], sizes = [2, 24, 8], strides = [1, 1, 1]} : vector<2x24x32xf32> to vector<2x24x8xf32>
      %95 = tpu.concatenate %91, %92, %93, %94 in 0 : vector<2x24x8xf32>, vector<2x24x8xf32>, vector<2x24x8xf32>, vector<2x24x8xf32> -> vector<8x24x8xf32>
      %96 = vector.shape_cast %85 : vector<48x32xf32> to vector<2x24x32xf32>
      %97 = vector.extract_strided_slice %96 {offsets = [0, 0, 0], sizes = [2, 24, 8], strides = [1, 1, 1]} : vector<2x24x32xf32> to vector<2x24x8xf32>
      %98 = vector.extract_strided_slice %96 {offsets = [0, 0, 8], sizes = [2, 24, 8], strides = [1, 1, 1]} : vector<2x24x32xf32> to vector<2x24x8xf32>
      %99 = vector.extract_strided_slice %96 {offsets = [0, 0, 16], sizes = [2, 24, 8], strides = [1, 1, 1]} : vector<2x24x32xf32> to vector<2x24x8xf32>
      %100 = vector.extract_strided_slice %96 {offsets = [0, 0, 24], sizes = [2, 24, 8], strides = [1, 1, 1]} : vector<2x24x32xf32> to vector<2x24x8xf32>
      %101 = tpu.concatenate %97, %98, %99, %100 in 0 : vector<2x24x8xf32>, vector<2x24x8xf32>, vector<2x24x8xf32>, vector<2x24x8xf32> -> vector<8x24x8xf32>
      %102 = vector.shape_cast %89 : vector<48x32xf32> to vector<2x24x32xf32>
      %103 = vector.extract_strided_slice %102 {offsets = [0, 0, 0], sizes = [2, 24, 8], strides = [1, 1, 1]} : vector<2x24x32xf32> to vector<2x24x8xf32>
      %104 = vector.extract_strided_slice %102 {offsets = [0, 0, 8], sizes = [2, 24, 8], strides = [1, 1, 1]} : vector<2x24x32xf32> to vector<2x24x8xf32>
      %105 = vector.extract_strided_slice %102 {offsets = [0, 0, 16], sizes = [2, 24, 8], strides = [1, 1, 1]} : vector<2x24x32xf32> to vector<2x24x8xf32>
      %106 = vector.extract_strided_slice %102 {offsets = [0, 0, 24], sizes = [2, 24, 8], strides = [1, 1, 1]} : vector<2x24x32xf32> to vector<2x24x8xf32>
      %107 = tpu.concatenate %103, %104, %105, %106 in 0 : vector<2x24x8xf32>, vector<2x24x8xf32>, vector<2x24x8xf32>, vector<2x24x8xf32> -> vector<8x24x8xf32>
      %108 = arith.truncf %95 : vector<8x24x8xf32> to vector<8x24x8xbf16>
      %109 = arith.truncf %101 : vector<8x24x8xf32> to vector<8x24x8xbf16>
      "tpu.trace_start"() <{level = 10 : i32, message = "bqd,bkd->bqk"}> : () -> ()
      %cst_41 = arith.constant dense<0.000000e+00> : vector<8x24x24xf32>
      %110 = tpu.matmul %108, %109, %cst_41 {dimension_numbers = #tpu.dot_dimension_numbers<[2], [2], [1], [1], [0, 0, 0, 1, 1, 1], [0], [0]>} : vector<8x24x8xbf16>, vector<8x24x8xbf16>, vector<8x24x24xf32> -> vector<8x24x24xf32>
      "tpu.trace_stop"() : () -> ()
      %cst_42 = arith.constant 0.353553385 : f32
      %111 = vector.broadcast %cst_42 : f32 to vector<8x24x24xf32>
      %112 = arith.mulf %110, %111 : vector<8x24x24xf32>
      %cst_43 = arith.constant -1.000000e+30 : f32
      %113 = vector.shape_cast %12 : vector<1x24x24xi1> to vector<1x24x24xi1>
      %114 = vector.broadcast %113 : vector<1x24x24xi1> to vector<8x24x24xi1>
      %115 = vector.broadcast %cst_43 : f32 to vector<8x24x24xf32>
      %116 = arith.select %114, %112, %115 : vector<8x24x24xi1>, vector<8x24x24xf32>
      %cst_44 = arith.constant dense<0xFF800000> : vector<8x24xf32>
      %117 = vector.multi_reduction <maximumf>, %116, %cst_44 [2] : vector<8x24x24xf32> to vector<8x24xf32>
      %118 = vector.shape_cast %117 : vector<8x24xf32> to vector<8x24x1xf32>
      %119 = vector.broadcast %118 : vector<8x24x1xf32> to vector<8x24x24xf32>
      %120 = arith.subf %116, %119 : vector<8x24x24xf32>
      %121 = math.exp %120 : vector<8x24x24xf32>
      %cst_45 = arith.constant dense<0.000000e+00> : vector<8x24xf32>
      %122 = vector.multi_reduction <add>, %121, %cst_45 [2] : vector<8x24x24xf32> to vector<8x24xf32>
      %123 = vector.shape_cast %122 : vector<8x24xf32> to vector<8x24x1xf32>
      %124 = tpu.reciprocal %123 {approx = true} : vector<8x24x1xf32> -> vector<8x24x1xf32>
      %125 = vector.broadcast %124 : vector<8x24x1xf32> to vector<8x24x24xf32>
      %126 = arith.mulf %121, %125 : vector<8x24x24xf32>
      %127 = arith.truncf %126 : vector<8x24x24xf32> to vector<8x24x24xbf16>
      %128 = arith.truncf %107 : vector<8x24x8xf32> to vector<8x24x8xbf16>
      "tpu.trace_start"() <{level = 10 : i32, message = "bqk,bkd->bqd"}> : () -> ()
      %cst_46 = arith.constant dense<0.000000e+00> : vector<8x24x8xf32>
      %129 = tpu.matmul %127, %128, %cst_46 {dimension_numbers = #tpu.dot_dimension_numbers<[2], [1], [1], [2], [0, 0, 0, 1, 1, 2], [0], [0]>} : vector<8x24x24xbf16>, vector<8x24x8xbf16>, vector<8x24x8xf32> -> vector<8x24x8xf32>
      "tpu.trace_stop"() : () -> ()
      %130 = vector.extract_strided_slice %129 {offsets = [0, 0, 0], sizes = [2, 24, 8], strides = [1, 1, 1]} : vector<8x24x8xf32> to vector<2x24x8xf32>
      %131 = vector.extract_strided_slice %129 {offsets = [2, 0, 0], sizes = [2, 24, 8], strides = [1, 1, 1]} : vector<8x24x8xf32> to vector<2x24x8xf32>
      %132 = vector.extract_strided_slice %129 {offsets = [4, 0, 0], sizes = [2, 24, 8], strides = [1, 1, 1]} : vector<8x24x8xf32> to vector<2x24x8xf32>
      %133 = vector.extract_strided_slice %129 {offsets = [6, 0, 0], sizes = [2, 24, 8], strides = [1, 1, 1]} : vector<8x24x8xf32> to vector<2x24x8xf32>
      %134 = tpu.concatenate %130, %131, %132, %133 in 2 : vector<2x24x8xf32>, vector<2x24x8xf32>, vector<2x24x8xf32>, vector<2x24x8xf32> -> vector<2x24x32xf32>
      %135 = vector.shape_cast %134 : vector<2x24x32xf32> to vector<48x32xf32>
      %136 = arith.truncf %135 : vector<48x32xf32> to vector<48x32xbf16>
      %137 = arith.index_cast %arg22 : i32 to index
      %c0_47 = arith.constant 0 : index
      %c0_48 = arith.constant 0 : index
      %138 = vector.load %arg9[%137, %c0_47, %c0_48] : memref<4x32x32xbf16, #tpu.memory_space<vmem>>, vector<1x32x32xbf16>
      %139 = vector.shape_cast %138 : vector<1x32x32xbf16> to vector<32x32xbf16>
      %cst_49 = arith.constant dense<0.000000e+00> : vector<48x32xf32>
      %140 = tpu.matmul %136, %139, %cst_49 {dimension_numbers = #tpu.dot_dimension_numbers<[1], [0], [0], [1], [0, 0, 1, 1], [], []>} : vector<48x32xbf16>, vector<32x32xbf16>, vector<48x32xf32> -> vector<48x32xf32>
      %141 = arith.index_cast %arg22 : i32 to index
      %c0_50 = arith.constant 0 : index
      %c0_51 = arith.constant 0 : index
      %142 = vector.load %arg10[%141, %c0_50, %c0_51] : memref<4x1x32xf32, #tpu.memory_space<vmem>>, vector<1x1x32xf32>
      %143 = vector.shape_cast %142 : vector<1x1x32xf32> to vector<1x32xf32>
      %144 = vector.broadcast %143 : vector<1x32xf32> to vector<48x32xf32>
      %145 = arith.addf %140, %144 : vector<48x32xf32>
      %cst_52 = arith.constant 1.000000e+00 : f32
      %146 = vector.broadcast %cst_52 : f32 to vector<48x32xf32>
      %147 = arith.mulf %145, %146 : vector<48x32xf32>
      %148 = arith.addf %arg23, %147 : vector<48x32xf32>
      %149 = arith.index_cast %arg22 : i32 to index
      %c0_53 = arith.constant 0 : index
      %c0_54 = arith.constant 0 : index
      %150 = vector.load %arg11[%149, %c0_53, %c0_54] : memref<4x1x32xf32, #tpu.memory_space<vmem>>, vector<1x1x32xf32>
      %151 = vector.shape_cast %150 : vector<1x1x32xf32> to vector<1x32xf32>
      %152 = arith.index_cast %arg22 : i32 to index
      %c0_55 = arith.constant 0 : index
      %c0_56 = arith.constant 0 : index
      %153 = vector.load %arg12[%152, %c0_55, %c0_56] : memref<4x1x32xf32, #tpu.memory_space<vmem>>, vector<1x1x32xf32>
      %154 = vector.shape_cast %153 : vector<1x1x32xf32> to vector<1x32xf32>
      %cst_57 = arith.constant dense<0.000000e+00> : vector<48xf32>
      %155 = vector.multi_reduction <add>, %148, %cst_57 [1] : vector<48x32xf32> to vector<48xf32>
      %156 = vector.shape_cast %155 : vector<48xf32> to vector<48x1xf32>
      %cst_58 = arith.constant 3.200000e+01 : f32
      %157 = vector.broadcast %cst_58 : f32 to vector<48x1xf32>
      %158 = arith.divf %156, %157 : vector<48x1xf32>
      %159 = vector.broadcast %158 : vector<48x1xf32> to vector<48x32xf32>
      %160 = arith.subf %148, %159 : vector<48x32xf32>
      %161 = arith.mulf %160, %160 : vector<48x32xf32>
      %cst_59 = arith.constant dense<0.000000e+00> : vector<48xf32>
      %162 = vector.multi_reduction <add>, %161, %cst_59 [1] : vector<48x32xf32> to vector<48xf32>
      %163 = vector.shape_cast %162 : vector<48xf32> to vector<48x1xf32>
      %cst_60 = arith.constant 3.200000e+01 : f32
      %164 = vector.broadcast %cst_60 : f32 to vector<48x1xf32>
      %165 = arith.divf %163, %164 : vector<48x1xf32>
      %166 = vector.broadcast %158 : vector<48x1xf32> to vector<48x32xf32>
      %167 = arith.subf %148, %166 : vector<48x32xf32>
      %cst_61 = arith.constant 9.99999974E-6 : f32
      %168 = vector.broadcast %cst_61 : f32 to vector<48x1xf32>
      %169 = arith.addf %165, %168 : vector<48x1xf32>
      %170 = math.rsqrt %169 : vector<48x1xf32>
      %171 = vector.broadcast %170 : vector<48x1xf32> to vector<48x32xf32>
      %172 = arith.mulf %167, %171 : vector<48x32xf32>
      %173 = vector.broadcast %151 : vector<1x32xf32> to vector<48x32xf32>
      %174 = arith.mulf %172, %173 : vector<48x32xf32>
      %175 = vector.broadcast %154 : vector<1x32xf32> to vector<48x32xf32>
      %176 = arith.addf %174, %175 : vector<48x32xf32>
      %177 = arith.truncf %176 : vector<48x32xf32> to vector<48x32xbf16>
      %178 = arith.index_cast %arg22 : i32 to index
      %c0_62 = arith.constant 0 : index
      %c0_63 = arith.constant 0 : index
      %179 = vector.load %arg13[%178, %c0_62, %c0_63] : memref<4x32x128xbf16, #tpu.memory_space<vmem>>, vector<1x32x128xbf16>
      %180 = vector.shape_cast %179 : vector<1x32x128xbf16> to vector<32x128xbf16>
      %cst_64 = arith.constant dense<0.000000e+00> : vector<48x128xf32>
      %181 = tpu.matmul %177, %180, %cst_64 {dimension_numbers = #tpu.dot_dimension_numbers<[1], [0], [0], [1], [0, 0, 1, 1], [], []>} : vector<48x32xbf16>, vector<32x128xbf16>, vector<48x128xf32> -> vector<48x128xf32>
      %182 = arith.index_cast %arg22 : i32 to index
      %c0_65 = arith.constant 0 : index
      %c0_66 = arith.constant 0 : index
      %183 = vector.load %arg14[%182, %c0_65, %c0_66] : memref<4x1x128xf32, #tpu.memory_space<vmem>>, vector<1x1x128xf32>
      %184 = vector.shape_cast %183 : vector<1x1x128xf32> to vector<1x128xf32>
      %185 = vector.broadcast %184 : vector<1x128xf32> to vector<48x128xf32>
      %186 = arith.addf %181, %185 : vector<48x128xf32>
      %cst_67 = arith.constant 5.000000e-01 : f32
      %187 = vector.broadcast %cst_67 : f32 to vector<48x128xf32>
      %188 = arith.mulf %187, %186 : vector<48x128xf32>
      %cst_68 = arith.constant 0.707106769 : f32
      %189 = vector.broadcast %cst_68 : f32 to vector<48x128xf32>
      %190 = arith.mulf %186, %189 : vector<48x128xf32>
      %191 = math.erf %190 : vector<48x128xf32>
      %cst_69 = arith.constant 1.000000e+00 : f32
      %192 = vector.broadcast %cst_69 : f32 to vector<48x128xf32>
      %193 = arith.addf %192, %191 : vector<48x128xf32>
      %194 = arith.mulf %188, %193 : vector<48x128xf32>
      %195 = arith.truncf %194 : vector<48x128xf32> to vector<48x128xbf16>
      %196 = arith.index_cast %arg22 : i32 to index
      %c0_70 = arith.constant 0 : index
      %c0_71 = arith.constant 0 : index
      %197 = vector.load %arg15[%196, %c0_70, %c0_71] : memref<4x128x32xbf16, #tpu.memory_space<vmem>>, vector<1x128x32xbf16>
      %198 = vector.shape_cast %197 : vector<1x128x32xbf16> to vector<128x32xbf16>
      %cst_72 = arith.constant dense<0.000000e+00> : vector<48x32xf32>
      %199 = tpu.matmul %195, %198, %cst_72 {dimension_numbers = #tpu.dot_dimension_numbers<[1], [0], [0], [1], [0, 0, 1, 1], [], []>} : vector<48x128xbf16>, vector<128x32xbf16>, vector<48x32xf32> -> vector<48x32xf32>
      %200 = arith.index_cast %arg22 : i32 to index
      %c0_73 = arith.constant 0 : index
      %c0_74 = arith.constant 0 : index
      %201 = vector.load %arg16[%200, %c0_73, %c0_74] : memref<4x1x32xf32, #tpu.memory_space<vmem>>, vector<1x1x32xf32>
      %202 = vector.shape_cast %201 : vector<1x1x32xf32> to vector<1x32xf32>
      %203 = vector.broadcast %202 : vector<1x32xf32> to vector<48x32xf32>
      %204 = arith.addf %199, %203 : vector<48x32xf32>
      %cst_75 = arith.constant 1.000000e+00 : f32
      %205 = vector.broadcast %cst_75 : f32 to vector<48x32xf32>
      %206 = arith.mulf %204, %205 : vector<48x32xf32>
      %207 = arith.addf %148, %206 : vector<48x32xf32>
      scf.yield %207 : vector<48x32xf32>
    }
    %c4_i32_6 = arith.constant 4 : i32
    %15 = vector.shape_cast %14 : vector<48x32xf32> to vector<2x24x32xf32>
    %16 = vector.extract_strided_slice %15 {offsets = [0, 0, 0], sizes = [2, 1, 32], strides = [1, 1, 1]} : vector<2x24x32xf32> to vector<2x1x32xf32>
    %17 = vector.shape_cast %16 : vector<2x1x32xf32> to vector<2x32xf32>
    %c0_7 = arith.constant 0 : index
    %c0_8 = arith.constant 0 : index
    %18 = vector.load %arg17[%c0_7, %c0_8] : memref<1x32xf32, #tpu.memory_space<vmem>>, vector<1x32xf32>
    %c0_9 = arith.constant 0 : index
    %c0_10 = arith.constant 0 : index
    %19 = vector.load %arg18[%c0_9, %c0_10] : memref<1x32xf32, #tpu.memory_space<vmem>>, vector<1x32xf32>
    %cst_11 = arith.constant dense<0.000000e+00> : vector<2xf32>
    %20 = vector.multi_reduction <add>, %17, %cst_11 [1] : vector<2x32xf32> to vector<2xf32>
    %21 = vector.shape_cast %20 : vector<2xf32> to vector<2x1xf32>
    %cst_12 = arith.constant 3.200000e+01 : f32
    %22 = vector.broadcast %cst_12 : f32 to vector<2x1xf32>
    %23 = arith.divf %21, %22 : vector<2x1xf32>
    %24 = vector.broadcast %23 : vector<2x1xf32> to vector<2x32xf32>
    %25 = arith.subf %17, %24 : vector<2x32xf32>
    %26 = arith.mulf %25, %25 : vector<2x32xf32>
    %cst_13 = arith.constant dense<0.000000e+00> : vector<2xf32>
    %27 = vector.multi_reduction <add>, %26, %cst_13 [1] : vector<2x32xf32> to vector<2xf32>
    %28 = vector.shape_cast %27 : vector<2xf32> to vector<2x1xf32>
    %cst_14 = arith.constant 3.200000e+01 : f32
    %29 = vector.broadcast %cst_14 : f32 to vector<2x1xf32>
    %30 = arith.divf %28, %29 : vector<2x1xf32>
    %31 = vector.broadcast %23 : vector<2x1xf32> to vector<2x32xf32>
    %32 = arith.subf %17, %31 : vector<2x32xf32>
    %cst_15 = arith.constant 9.99999974E-6 : f32
    %33 = vector.broadcast %cst_15 : f32 to vector<2x1xf32>
    %34 = arith.addf %30, %33 : vector<2x1xf32>
    %35 = math.rsqrt %34 : vector<2x1xf32>
    %36 = vector.broadcast %35 : vector<2x1xf32> to vector<2x32xf32>
    %37 = arith.mulf %32, %36 : vector<2x32xf32>
    %38 = vector.broadcast %18 : vector<1x32xf32> to vector<2x32xf32>
    %39 = arith.mulf %37, %38 : vector<2x32xf32>
    %40 = vector.broadcast %19 : vector<1x32xf32> to vector<2x32xf32>
    %41 = arith.addf %39, %40 : vector<2x32xf32>
    %42 = arith.truncf %41 : vector<2x32xf32> to vector<2x32xbf16>
    %c0_16 = arith.constant 0 : index
    %c0_17 = arith.constant 0 : index
    %43 = vector.load %arg19[%c0_16, %c0_17] : memref<32x128xbf16, #tpu.memory_space<vmem>>, vector<32x128xbf16>
    %cst_18 = arith.constant dense<0.000000e+00> : vector<2x128xf32>
    %44 = tpu.matmul %42, %43, %cst_18 {dimension_numbers = #tpu.dot_dimension_numbers<[1], [0], [0], [1], [0, 0, 1, 1], [], []>} : vector<2x32xbf16>, vector<32x128xbf16>, vector<2x128xf32> -> vector<2x128xf32>
    %c0_19 = arith.constant 0 : index
    %c0_20 = arith.constant 0 : index
    %45 = vector.load %arg20[%c0_19, %c0_20] : memref<1x128xf32, #tpu.memory_space<vmem>>, vector<1x128xf32>
    %46 = vector.broadcast %45 : vector<1x128xf32> to vector<2x128xf32>
    %47 = arith.addf %44, %46 : vector<2x128xf32>
    %c0_21 = arith.constant 0 : index
    %c0_22 = arith.constant 0 : index
    %48 = vector.load %arg21[%c0_21, %c0_22] : memref<2x128xf32, #tpu.memory_space<vmem>>, vector<2x128xf32>
    tpu.vector_store %arg21[%c0_21, %c0_22], %47 {strides = array<i32>} : memref<2x128xf32, #tpu.memory_space<vmem>>, vector<2x128xf32>,
    return
  }
  func.func @transform_0(%arg0: i32) -> (i32, i32, i32) {
    %c0_i32 = arith.constant 0 : i32
    %c0_i32_0 = arith.constant 0 : i32
    %c0_i32_1 = arith.constant 0 : i32
    return %arg0, %c0_i32, %c0_i32_0 : i32, i32, i32
  }
  func.func @transform_1(%arg0: i32) -> (i32, i32) {
    %c0_i32 = arith.constant 0 : i32
    %c0_i32_0 = arith.constant 0 : i32
    %c0_i32_1 = arith.constant 0 : i32
    return %c0_i32, %c0_i32_0 : i32, i32
  }
  func.func @transform_2(%arg0: i32) -> (i32, i32) {
    %c0_i32 = arith.constant 0 : i32
    %c0_i32_0 = arith.constant 0 : i32
    %c0_i32_1 = arith.constant 0 : i32
    return %c0_i32, %c0_i32_0 : i32, i32
  }
  func.func @transform_3(%arg0: i32) -> (i32, i32, i32) {
    %c0_i32 = arith.constant 0 : i32
    %c0_i32_0 = arith.constant 0 : i32
    %c0_i32_1 = arith.constant 0 : i32
    %c0_i32_2 = arith.constant 0 : i32
    return %c0_i32, %c0_i32_0, %c0_i32_1 : i32, i32, i32
  }
  func.func @transform_4(%arg0: i32) -> (i32, i32, i32) {
    %c0_i32 = arith.constant 0 : i32
    %c0_i32_0 = arith.constant 0 : i32
    %c0_i32_1 = arith.constant 0 : i32
    %c0_i32_2 = arith.constant 0 : i32
    return %c0_i32, %c0_i32_0, %c0_i32_1 : i32, i32, i32
  }
  func.func @transform_5(%arg0: i32) -> (i32, i32, i32) {
    %c0_i32 = arith.constant 0 : i32
    %c0_i32_0 = arith.constant 0 : i32
    %c0_i32_1 = arith.constant 0 : i32
    %c0_i32_2 = arith.constant 0 : i32
    return %c0_i32, %c0_i32_0, %c0_i32_1 : i32, i32, i32
  }
  func.func @transform_6(%arg0: i32) -> (i32, i32, i32) {
    %c0_i32 = arith.constant 0 : i32
    %c0_i32_0 = arith.constant 0 : i32
    %c0_i32_1 = arith.constant 0 : i32
    %c0_i32_2 = arith.constant 0 : i32
    return %c0_i32, %c0_i32_0, %c0_i32_1 : i32, i32, i32
  }
  func.func @transform_7(%arg0: i32) -> (i32, i32, i32) {
    %c0_i32 = arith.constant 0 : i32
    %c0_i32_0 = arith.constant 0 : i32
    %c0_i32_1 = arith.constant 0 : i32
    %c0_i32_2 = arith.constant 0 : i32
    return %c0_i32, %c0_i32_0, %c0_i32_1 : i32, i32, i32
  }
  func.func @transform_8(%arg0: i32) -> (i32, i32, i32) {
    %c0_i32 = arith.constant 0 : i32
    %c0_i32_0 = arith.constant 0 : i32
    %c0_i32_1 = arith.constant 0 : i32
    %c0_i32_2 = arith.constant 0 : i32
    return %c0_i32, %c0_i32_0, %c0_i32_1 : i32, i32, i32
  }
  func.func @transform_9(%arg0: i32) -> (i32, i32, i32) {
    %c0_i32 = arith.constant 0 : i32
    %c0_i32_0 = arith.constant 0 : i32
    %c0_i32_1 = arith.constant 0 : i32
    %c0_i32_2 = arith.constant 0 : i32
    return %c0_i32, %c0_i32_0, %c0_i32_1 : i32, i32, i32
  }
  func.func @transform_10(%arg0: i32) -> (i32, i32, i32) {
    %c0_i32 = arith.constant 0 : i32
    %c0_i32_0 = arith.constant 0 : i32
    %c0_i32_1 = arith.constant 0 : i32
    %c0_i32_2 = arith.constant 0 : i32
    return %c0_i32, %c0_i32_0, %c0_i32_1 : i32, i32, i32
  }
  func.func @transform_11(%arg0: i32) -> (i32, i32, i32) {
    %c0_i32 = arith.constant 0 : i32
    %c0_i32_0 = arith.constant 0 : i32
    %c0_i32_1 = arith.constant 0 : i32
    %c0_i32_2 = arith.constant 0 : i32
    return %c0_i32, %c0_i32_0, %c0_i32_1 : i32, i32, i32
  }
  func.func @transform_12(%arg0: i32) -> (i32, i32, i32) {
    %c0_i32 = arith.constant 0 : i32
    %c0_i32_0 = arith.constant 0 : i32
    %c0_i32_1 = arith.constant 0 : i32
    %c0_i32_2 = arith.constant 0 : i32
    return %c0_i32, %c0_i32_0, %c0_i32_1 : i32, i32, i32
  }
  func.func @transform_13(%arg0: i32) -> (i32, i32, i32) {
    %c0_i32 = arith.constant 0 : i32
    %c0_i32_0 = arith.constant 0 : i32
    %c0_i32_1 = arith.constant 0 : i32
    %c0_i32_2 = arith.constant 0 : i32
    return %c0_i32, %c0_i32_0, %c0_i32_1 : i32, i32, i32
  }
  func.func @transform_14(%arg0: i32) -> (i32, i32, i32) {
    %c0_i32 = arith.constant 0 : i32
    %c0_i32_0 = arith.constant 0 : i32
    %c0_i32_1 = arith.constant 0 : i32
    %c0_i32_2 = arith.constant 0 : i32
    return %c0_i32, %c0_i32_0, %c0_i32_1 : i32, i32, i32
  }
  func.func @transform_15(%arg0: i32) -> (i32, i32, i32) {
    %c0_i32 = arith.constant 0 : i32
    %c0_i32_0 = arith.constant 0 : i32
    %c0_i32_1 = arith.constant 0 : i32
    %c0_i32_2 = arith.constant 0 : i32
    return %c0_i32, %c0_i32_0, %c0_i32_1 : i32, i32, i32
  }
  func.func @transform_16(%arg0: i32) -> (i32, i32) {
    %c0_i32 = arith.constant 0 : i32
    %c0_i32_0 = arith.constant 0 : i32
    %c0_i32_1 = arith.constant 0 : i32
    return %c0_i32, %c0_i32_0 : i32, i32
  }
  func.func @transform_17(%arg0: i32) -> (i32, i32) {
    %c0_i32 = arith.constant 0 : i32
    %c0_i32_0 = arith.constant 0 : i32
    %c0_i32_1 = arith.constant 0 : i32
    return %c0_i32, %c0_i32_0 : i32, i32
  }
  func.func @transform_18(%arg0: i32) -> (i32, i32) {
    %c0_i32 = arith.constant 0 : i32
    %c0_i32_0 = arith.constant 0 : i32
    %c0_i32_1 = arith.constant 0 : i32
    return %c0_i32, %c0_i32_0 : i32, i32
  }
  func.func @transform_19(%arg0: i32) -> (i32, i32) {
    %c0_i32 = arith.constant 0 : i32
    %c0_i32_0 = arith.constant 0 : i32
    %c0_i32_1 = arith.constant 0 : i32
    return %c0_i32, %c0_i32_0 : i32, i32
  }
  func.func @transform_20(%arg0: i32) -> (i32, i32) {
    %c0_i32 = arith.constant 0 : i32
    %c0_i32_0 = arith.constant 0 : i32
    return %arg0, %c0_i32 : i32, i32
  }
}

</mosaic_0001>

<bundles_post_ra>
// kernel: forward.1
= control target key start
LH: loop header
LB: loop body
LE: loop exit
PB: predicated region body
PF: predicated region fallthrough
CT: control target
= control target key end

     0   :  { %s4830_s0 = inlined_call_operand.vmem [shape: bf16[2,24,48], index: 0, kind: input, shape index: {}]   ;;  %s4831_s1 = inlined_call_operand.vmem [shape: f32[24,32], index: 1, kind: input, shape index: {}]   ;;  %s4832_s2 = inlined_call_operand.vmem [shape: bf16[48,32], index: 2, kind: input, shape index: {}]   ;;  %s4833_s3 = inlined_call_operand.vmem [shape: f32[4,1,32], index: 3, kind: input, shape index: {}]   ;;  %s4834_s4 = inlined_call_operand.vmem [shape: f32[4,1,32], index: 4, kind: input, shape index: {}]   ;;  %s4835_s5 = inlined_call_operand.vmem [shape: bf16[4,32,32], index: 5, kind: input, shape index: {}]   ;;  %s4836_s6 = inlined_call_operand.vmem [shape: bf16[4,32,32], index: 6, kind: input, shape index: {}]   ;;  %s4837_s7 = inlined_call_operand.vmem [shape: bf16[4,32,32], index: 7, kind: input, shape index: {}]   ;;  %s4838_s8 = inlined_call_operand.vmem [shape: bf16[4,32,32], index: 8, kind: input, shape index: {}]   ;;  %s4839_s9 = inlined_call_operand.vmem [shape: f32[4,1,32], index: 9, kind: input, shape index: {}]   ;;  %s4840_s10 = inlined_call_operand.vmem [shape: f32[4,1,32], index: 10, kind: input, shape index: {}]   ;;  %s4841_s11 = inlined_call_operand.vmem [shape: f32[4,1,32], index: 11, kind: input, shape index: {}]   ;;  %s4842_s12 = inlined_call_operand.vmem [shape: bf16[4,32,128], index: 12, kind: input, shape index: {}]   ;;  %s4843_s13 = inlined_call_operand.vmem [shape: f32[4,1,128], index: 13, kind: input, shape index: {}]   ;;  %s4844_s14 = inlined_call_operand.vmem [shape: bf16[4,128,32], index: 14, kind: input, shape index: {}]   ;;  %s4845_s15 = inlined_call_operand.vmem [shape: f32[4,1,32], index: 15, kind: input, shape index: {}]   ;;  %s4846_s16 = inlined_call_operand.vmem [shape: f32[1,32], index: 16, kind: input, shape index: {}]   ;;  %s4847_s17 = inlined_call_operand.vmem [shape: f32[1,32], index: 17, kind: input, shape index: {}]   ;;  %s4848_s18 = inlined_call_operand.vmem [shape: bf16[32,128], index: 18, kind: input, shape index: {}]   ;;  %s4849_s19 = inlined_call_operand.vmem [shape: f32[1,128], index: 19, kind: input, shape index: {}]   ;;  %s4850_s20 = inlined_call_operand.hbm [shape: f32[2,128], index: 20, kind: output, shape index: {}]  }
   0x1   :  { %4854 = sst [smem:[#allocation5_spill]] %s4830_s0 }
   0x2   :  { %4855 = sst [smem:[#allocation6_spill]] %s4831_s1 }
   0x3   :  { %4856 = sst [smem:[#allocation7_spill]] %s4832_s2 }
   0x4   :  { %4857 = sst [smem:[#allocation8_spill]] %s4833_s3 }
   0x5   :  { %4858 = sst [smem:[#allocation9_spill]] %s4834_s4 }
   0x6   :  { %s4859_s23 = sld [smem:[#allocation7_spill]]  ;;  %v3771_v1 = vmov 0.0  }
   0x7   :  { %3270 = vmatprep.subr.bf16.mxu1 %v3771_v1 }
   0xc   :  { %v3371_v0 = vld [vmem:[%s4859_s23] sm:$0xff]  }
   0xd   :  { %25 = vsyncpa [#allocation3], 0  ;;  %3008 = vmatprep.subr.bf16.mxu0 %v3771_v1  ;;  %3273 = vmatpush3.bf16.msra.mxu1 %v3371_v0  ;;  %v3372_v2 = vld [vmem:[%s4859_s23 + $0x8] sm:$0xff]   ;;  %vm3772_vm0 = vmmov 0   ;;  %v3373_v3 = vld [vmem:[%s4859_s23 + $0x10] sm:$0xff]   ;;  %s4860_s28 = sld [smem:[#allocation5_spill]]  ;;  %v188_v7 = vlaneseq }
   0xe   :  { %3009 = vmatpush3.bf16.msra.mxu0 %v3371_v0  ;;  %3271 = vmatprep.subr.bf16.mxu1 %v3771_v1  ;;  %vm112_vm1 = vcmask 392192   ;;  %s4861_s22 = sld [smem:[#allocation6_spill]]  ;;  %s3941_s3 = smov 0  }
   0xf   :  { %3010 = vmatprep.subr.bf16.mxu0 %v3771_v1  ;;  %3018 = vmatprep.mubr.msk.bf16.mxu1 %vm3772_vm0, %v3771_v1  ;;  %v3917_v8 = vand.u32 127, %v188_v7 }
  0x10   :  { %3014 = vmatprep.mubr.msk.bf16.mxu0 %vm3772_vm0, %v3771_v1 }
  0x11   :  { %3274 = vmatpush3.bf16.msra.mxu1 %v3372_v2  ;;  %vm190_vm2 = vcmp.le.s32.totalorder %v3917_v8, 16 }
  0x12   :  { %3011 = vmatpush3.bf16.msra.mxu0 %v3372_v2  ;;  %3272 = vmatprep.subr.bf16.mxu1 %v3771_v1 }
  0x13   :  { %3012 = vmatprep.subr.bf16.mxu0 %v3771_v1  ;;  %v3374_v4 = vld [vmem:[%s4860_s28 + $0x8] sm:$0xff]   ;;  %v3375_v5 = vld [vmem:[%s4860_s28] sm:$0xff]   ;;  %v3376_v6 = vld [vmem:[%s4860_s28 + $0x10] sm:$0xff]  }
  0x14   :  { %v181_v9 = vld [vmem:[%s4861_s22 + $0x10] sm:$0xff]  ;;  %v179_v11 = vld [vmem:[%s4861_s22] sm:$0xff]  ;;  %v180_v13 = vld [vmem:[%s4861_s22 + $0x8] sm:$0xff] }
  0x15   :  { %3275 = vmatpush3.bf16.msra.mxu1 %v3373_v3 }
  0x16   :  { %3013 = vmatpush3.bf16.msra.mxu0 %v3373_v3 }
  0x18   :  { %3019 = vmatmul.mubr.msk.bf16.vlgmr.msra.gmra.mrb[0].mxu1 %vm112_vm1, %v3374_v4 }
  0x19   :  { %3015 = vmatmul.mubr.msk.bf16.vlgmr.msra.gmra.mrb[0].mxu0 %vm112_vm1, %v3375_v5  ;;  %3022 = vmatprep.mubr.msk.bf16.mxu1 %vm3772_vm0, %v3771_v1 }
  0x20   :  { %3023 = vmatmul.mubr.msk.bf16.gmra.mrb[4].mxu1 %vm112_vm1, %v3376_v6 }
  0xeb   :  { %v164_v10 = vpop.f32.mrb[0].mxu1 }
  0xec   :  { %v156_v12 = vpop.f32.mrb[0].mxu0  ;;  %v184_v14 = vadd.f32 %v181_v9, %v164_v10   ;;  %v3020_v15 = vpop.f32.mrb[1].mxu1 }
  0xed   :  { %v182_v16 = vadd.f32 %v179_v11, %v156_v12   ;;  %v3016_v17 = vpop.f32.mrb[1].mxu0  ;;  %v167_v18 = vpop.f32.mrb[2].mxu1 }
  0xee   :  { %v159_v19 = vpop.f32.mrb[2].mxu0  ;;  %v185_v20 = vadd.f32 %v179_v11, %v167_v18   ;;  %v3021_v21 = vpop.f32.mrb[3].mxu1 }
  0xef   :  { %v183_v22 = vadd.f32 %v180_v13, %v159_v19   ;;  %v3017_v23 = vpop.f32.mrb[3].mxu0 }
  0xf3   :  { %v172_v24 = vpop.f32.mrb[4].mxu1 }
  0xf4   :  { %v186_v25 = vadd.f32 %v180_v13, %v172_v24   ;;  %v3024_v26 = vpop.f32.mrb[5].mxu1 }
  0xf5   :  { %v175_v27 = vpop.f32.mrb[6].mxu1 }
  0xf6   :  { %v187_v28 = vadd.f32 %v181_v9, %v175_v27   ;;  %v3025_v29 = vpop.f32.mrb[7].mxu1 }
  0xf7 LB: > { %vm207_vm3 = vcmask 261120   ;;  %s4013_s26 = sshll.u32 %s3769_s3, 4  ;;  %v3773_v3 = vmov 0.0   ;;  %s2898_s29 = sshll.u32 %s3769_s3, 6  ;;  %vm3774_vm4 = vmmov 0   ;;  %vm761_vm5 = vcmask 64512   ;;  %s3769_s3 = sphi %s3941_s3, %s196_s3   ;;  %v3765_v16 = vphi %v182_v16, %v4867_v16   ;;  %v3761_v22 = vphi %v183_v22, %v4866_v22   ;;  %v3757_v14 = vphi %v184_v14, %v4865_v14   ;;  %v3753_v20 = vphi %v185_v20, %v4864_v20   ;;  %v3749_v25 = vphi %v186_v25, %v2608_v25   ;;  %v3745_v28 = vphi %v187_v28, %v2609_v28  }
  0xf8   : > { %v208_v30 = vsel %vm207_vm3, %v3765_v16, 0.0  ;;  %v214_v31 = vsel %vm207_vm3, %v3757_v14, 0.0  ;;  %v211_v32 = vsel %vm207_vm3, %v3761_v22, 0.0  ;;  %v217_v33 = vsel %vm207_vm3, %v3753_v20, 0.0  ;;  %3026 = vmatprep.subr.bf16.mxu0 %v3773_v3  ;;  %s316_s4 = scalar_lea.vmem %s4835_s5, %s4013_s26  ;;  %3276 = vmatprep.subr.bf16.mxu1 %v3773_v3  ;;  %s400_s21 = scalar_lea.vmem %s4836_s6, %s4013_s26 }
  0xf9   : > { %209 = vadd.xlane.f32.xlu0 %v208_v30  ;;  %215 = vadd.xlane.f32.xlu1 %v214_v31  ;;  %v220_v34 = vsel %vm207_vm3, %v3749_v25, 0.0  ;;  %v223_v35 = vsel %vm207_vm3, %v3745_v28, 0.0  ;;  %v3537_v4 = vld [vmem:[%s316_s4] sm:$0xff]   ;;  %v3538_v5 = vld [vmem:[%s316_s4 + $0x8] sm:$0xff]   ;;  %s4033_s23 = scalar_lea.vmem %s4844_s14, %s2898_s29  ;;  %s4042_s25 = scalar_lea.vmem %s4837_s7, %s4013_s26  ;;  %vm1595_vm6 = vcmask 1043456   ;;  %vm1292_vm7 = vcmask 195584  }
  0xfa   : > { %3030 = vmatprep.mubr.msk.bf16.mxu0 %vm3774_vm4, %v3773_v3  ;;  %3050 = vmatprep.mubr.msk.bf16.mxu1 %vm3774_vm4, %v3773_v3  ;;  %v3539_v6 = vld [vmem:[%s400_s21] sm:$0xff]   ;;  %v3540_v7 = vld [vmem:[%s400_s21 + $0x8] sm:$0xff]   ;;  %s4862_s4 = sld [smem:[#allocation8_spill]]  ;;  %s4863_s21 = sld [smem:[#allocation9_spill]]  ;;  %vm2124_vm8 = vcmask 130048  }
  0xfb   : > { %3027 = vmatpush3.bf16.msra.mxu0 %v3537_v4  ;;  %3278 = vmatpush3.bf16.msra.mxu1 %v3539_v6  ;;  %s3775_s22 = smov 120   ;;  %s3776_s24 = smov 112  }
  0xfc   : > { %3028 = vmatprep.subr.bf16.mxu0 %v3773_v3  ;;  %3277 = vmatprep.subr.bf16.mxu1 %v3773_v3  ;;  %s3777_s2 = smov 104   ;;  %s3780_s30 = smov 24  }
  0xfd   : > { %212 = vadd.xlane.f32.xlu0 %v211_v32  ;;  %218 = vadd.xlane.f32.xlu1 %v217_v33  ;;  %s2238_s27 = scalar_lea.vmem %s4840_s10, %s3769_s3 }
  0xff   : > { %3029 = vmatpush3.bf16.msra.mxu0 %v3538_v5  ;;  %3279 = vmatpush3.bf16.msra.mxu1 %v3540_v7 }
 0x100   : > { %3042 = vmatprep.subr.bf16.mxu0 %v3773_v3  ;;  %s203_s29 = scalar_lea.vmem %s4862_s4, %s3769_s3  ;;  %s205_s1 = scalar_lea.vmem %s4863_s21, %s3769_s3 }
 0x101   : > { %221 = vadd.xlane.f32.xlu0 %v220_v34  ;;  %224 = vadd.xlane.f32.xlu1 %v223_v35  ;;  %v2807_v35 = vld [vmem:[%s203_s29] ss:$0 sm:$0xff]  ;;  %s2141_s4 = scalar_lea.vmem %s4838_s8, %s4013_s26  ;;  %s3779_s29 = smov 16  }
 0x102   : > { %s2353_s21 = scalar_lea.vmem %s4843_s13, %s3769_s3 }
 0x186   : > { %v210_v36 = vpop.xlane.xlu0 %209  ;;  %v216_v37 = vpop.xlane.xlu1 %215 }
 0x187   : > { %v227_v38 = vmul.f32 0.03125, %v210_v36  ;;  %v229_v39 = vmul.f32 0.03125, %v216_v37 }
 0x189   : > { %v3977_v40 = vsub.f32 %v3765_v16, %v227_v38  ;;  %v3980_v41 = vsub.f32 %v3757_v14, %v229_v39 }
 0x18a   : > { %v213_v42 = vpop.xlane.xlu0 %212  ;;  %v219_v43 = vpop.xlane.xlu1 %218 }
 0x18b   : > { %v228_v44 = vmul.f32 0.03125, %v213_v42  ;;  %v230_v45 = vmul.f32 0.03125, %v219_v43  ;;  %v239_v46 = vmul.f32 %v3977_v40, %v3977_v40  ;;  %v241_v47 = vmul.f32 %v3980_v41, %v3980_v41  ;;  %v2808_v43 = vld [vmem:[%s205_s1] ss:$0 sm:$0xff]  ;;  %s2146_s1 = scalar_lea.vmem %s4839_s9, %s3769_s3 }
 0x18d   : > { %v3987_v48 = vsub.f32 %v3761_v22, %v228_v44  ;;  %v3990_v49 = vsub.f32 %v3753_v20, %v230_v45  ;;  %v245_v50 = vsel %vm207_vm3, %v239_v46, 0.0  ;;  %v251_v52 = vsel %vm207_vm3, %v241_v47, 0.0 }
 0x18e   : > { %246 = vadd.xlane.f32.xlu0 %v245_v50  ;;  %v222_v51 = vpop.xlane.xlu0 %221  ;;  %v225_v53 = vpop.xlane.xlu1 %224 }
 0x18f   : > { %v231_v54 = vmul.f32 0.03125, %v222_v51  ;;  %v240_v55 = vmul.f32 %v3987_v48, %v3987_v48  ;;  %v232_v56 = vmul.f32 0.03125, %v225_v53  ;;  %v242_v57 = vmul.f32 %v3990_v49, %v3990_v49 }
 0x191   : > { %v3999_v58 = vsub.f32 %v3749_v25, %v231_v54  ;;  %v248_v59 = vsel %vm207_vm3, %v240_v55, 0.0  ;;  %v4003_v60 = vsub.f32 %v3745_v28, %v232_v56  ;;  %v254_v62 = vsel %vm207_vm3, %v242_v57, 0.0 }
 0x192   : > { %252 = vadd.xlane.f32.xlu0 %v251_v52  ;;  %249 = vadd.xlane.f32.xlu1 %v248_v59 }
 0x193   : > { %v243_v61 = vmul.f32 %v3999_v58, %v3999_v58  ;;  %v244_v63 = vmul.f32 %v4003_v60, %v4003_v60 }
 0x195   : > { %v257_v0 = vsel %vm207_vm3, %v243_v61, 0.0  ;;  %v260_v2 = vsel %vm207_vm3, %v244_v63, 0.0  ;;  %v3542_v63 = vld [vmem:[%s4042_s25 + $0x8] sm:$0xff]  }
 0x196   : > { %258 = vadd.xlane.f32.xlu0 %v257_v0  ;;  %255 = vadd.xlane.f32.xlu1 %v254_v62  ;;  %v3541_v62 = vld [vmem:[%s4042_s25] sm:$0xff]   ;;  %s3778_s25 = smov 8  }
 0x19a   : > { %261 = vadd.xlane.f32.xlu1 %v260_v2 }
 0x21b   : > { %v247_v9 = vpop.xlane.xlu0 %246 }
 0x21c   : > { %v263_v10 = vmul.f32 0.03125, %v247_v9 }
 0x21e   : > { %v269_v11 = vadd.f32 1e-05, %v263_v10 }
 0x21f   : > { %v253_v12 = vpop.xlane.xlu0 %252  ;;  %v250_v13 = vpop.xlane.xlu1 %249 }
 0x220   : > { %3555 = vrsqrt.f32 %v269_v11  ;;  %v265_v15 = vmul.f32 0.03125, %v253_v12  ;;  %v264_v17 = vmul.f32 0.03125, %v250_v13 }
 0x222   : > { %v271_v18 = vadd.f32 1e-05, %v265_v15  ;;  %v270_v19 = vadd.f32 1e-05, %v264_v17 }
 0x223   : > { %v259_v21 = vpop.xlane.xlu0 %258  ;;  %v256_v23 = vpop.xlane.xlu1 %255 }
 0x224   : > { %3557 = vrsqrt.f32 %v271_v18  ;;  %v267_v24 = vmul.f32 0.03125, %v259_v21  ;;  %v266_v26 = vmul.f32 0.03125, %v256_v23 }
 0x225   : > { %3559 = vrsqrt.f32 %v270_v19 }
 0x226   : > { %v272_v27 = vadd.f32 1e-05, %v266_v26  ;;  %v273_v29 = vadd.f32 1e-05, %v267_v24 }
 0x227   : > { %v262_v30 = vpop.xlane.xlu1 %261 }
 0x228   : > { %v268_v31 = vmul.f32 0.03125, %v262_v30  ;;  %3561 = vrsqrt.f32 %v272_v27 }
 0x229   : > { %3563 = vrsqrt.f32 %v273_v29 }
 0x22a   : > { %v3556_v32 = vpop.eup %3555  ;;  %v274_v33 = vadd.f32 1e-05, %v268_v31 }
 0x22b   : > { %v281_v34 = vmul.f32 %v3556_v32, %v3977_v40 }
 0x22c   : > { %3565 = vrsqrt.f32 %v274_v33 }
 0x22d   : > { %v293_v39 = vmul.f32 %v2807_v35, %v281_v34 }
 0x22e   : > { %v3558_v36 = vpop.eup %3557 }
 0x22f   : > { %v3560_v37 = vpop.eup %3559  ;;  %v283_v42 = vmul.f32 %v3558_v36, %v3980_v41  ;;  %v305_v46 = vadd.f32 %v2808_v43, %v293_v39 }
 0x230   : > { %v282_v38 = vmul.f32 %v3560_v37, %v3987_v48 }
 0x231   : > { %v295_v40 = vmul.f32 %v2807_v35, %v283_v42 }
 0x232   : > { %v294_v44 = vmul.f32 %v2807_v35, %v282_v38  ;;  %v3562_v45 = vpop.eup %3561 }
 0x233   : > { %v284_v50 = vmul.f32 %v3562_v45, %v3990_v49  ;;  %v3564_v51 = vpop.eup %3563  ;;  %v307_v48 = vadd.f32 %v2808_v43, %v295_v40 }
 0x234   : > { %v306_v47 = vadd.f32 %v2808_v43, %v294_v44  ;;  %v285_v41 = vmul.f32 %v3564_v51, %v3999_v58 }
 0x235   : > { %v296_v54 = vmul.f32 %v2807_v35, %v284_v50 }
 0x236   : > { %v3566_v52 = vpop.eup %3565  ;;  %v311_v53 = vpack.c.bf16 %v306_v47, %v305_v46  ;;  %v297_v59 = vmul.f32 %v2807_v35, %v285_v41 }
 0x237   : > { %v286_v55 = vmul.f32 %v3566_v52, %v4003_v60  ;;  %v308_v56 = vadd.f32 %v2808_v43, %v296_v54 }
 0x238   : > { %3031 = vmatmul.mubr.msk.bf16.vlgmr.msra.gmra.mrb[0].mxu0 %vm207_vm3, %v311_v53  ;;  %v309_v58 = vadd.f32 %v2808_v43, %v297_v59 }
 0x239   : > { %3043 = vmatpush3.bf16.msra.mxu0 %v3539_v6  ;;  %3034 = vmatprep.mubr.msk.bf16.mxu0 %vm3774_vm4, %v3773_v3  ;;  %v312_v57 = vpack.c.bf16 %v308_v56, %v307_v48  ;;  %v298_v49 = vmul.f32 %v2807_v35, %v286_v55 }
 0x23a   : > { %3044 = vmatprep.subr.bf16.mxu0 %v3773_v3 }
 0x23b   : > { %3051 = vmatmul.mubr.msk.bf16.vlgmr.msra.gmra.mrb[0].mxu1 %vm207_vm3, %v312_v57  ;;  %v310_v60 = vadd.f32 %v2808_v43, %v298_v49 }
 0x23c   : > { %3054 = vmatprep.mubr.msk.bf16.mxu1 %vm3774_vm4, %v3773_v3 }
 0x23d   : > { %3045 = vmatpush3.bf16.msra.mxu0 %v3540_v7  ;;  %v313_v61 = vpack.c.bf16 %v310_v60, %v309_v58 }
 0x23e   : > { %3058 = vmatprep.subr.bf16.mxu0 %v3773_v3 }
 0x240   : > { %3035 = vmatmul.mubr.msk.bf16.gmra.mrb[4].mxu0 %vm207_vm3, %v312_v57 }
 0x241   : > { %3038 = vmatprep.mubr.msk.bf16.mxu0 %vm3774_vm4, %v3773_v3 }
 0x243   : > { %3055 = vmatmul.mubr.msk.bf16.gmra.mrb[4].mxu1 %vm207_vm3, %v313_v61 }
 0x248   : > { %3039 = vmatmul.mubr.msk.bf16.gmra.mrb[8].mxu0 %vm207_vm3, %v313_v61 }
 0x249   : > { %3046 = vmatprep.mubr.msk.bf16.mxu0 %vm3774_vm4, %v3773_v3 }
 0x250   : > { %3047 = vmatmul.mubr.msk.bf16.vlgmr.msra.gmra.mrb[12].mxu0 %vm207_vm3, %v311_v53 }
 0x251   : > { %3059 = vmatpush3.bf16.msra.mxu0 %v3541_v62  ;;  %3062 = vmatprep.mubr.msk.bf16.mxu0 %vm3774_vm4, %v3773_v3 }
 0x252   : > { %3060 = vmatprep.subr.bf16.mxu0 %v3773_v3 }
 0x255   : > { %3061 = vmatpush3.bf16.msra.mxu0 %v3542_v63 }
 0x258   : > { %3063 = vmatmul.mubr.msk.bf16.vlgmr.msra.gmra.mrb[16].mxu0 %vm207_vm3, %v311_v53 }
 0x259   : > { %3066 = vmatprep.mubr.msk.bf16.mxu0 %vm3774_vm4, %v3773_v3 }
 0x260   : > { %3067 = vmatmul.mubr.msk.bf16.gmra.mrb[20].mxu0 %vm207_vm3, %v312_v57 }
 0x261   : > { %3070 = vmatprep.mubr.msk.bf16.mxu0 %vm3774_vm4, %v3773_v3 }
 0x268   : > { %3071 = vmatmul.mubr.msk.bf16.gmra.mrb[24].mxu0 %vm207_vm3, %v313_v61 }
 0x30b   : > { %v4086_v0 = vpop.f32.mrb[0].mxu0 }
 0x30c   : > { %v3032_v2 = vpop.f32.mrb[1].mxu0 }
 0x30d   : > { %v4088_v4 = vpop.f32.mrb[2].mxu0 }
 0x30e   : > { %v729_v5 = vpack.c.bf16 %v4088_v4, %v4086_v0  ;;  %v3033_v6 = vpop.f32.mrb[3].mxu0  ;;  %v3447_v7 = vpack.i.bf16 %v4088_v4, %v4086_v0  ;;  %v459_v9 = vpop.f32.mrb[0].mxu1 }
 0x30f   : > { %v3052_v10 = vpop.f32.mrb[1].mxu1  ;;  %v746_v47 = vpack.c.bf16 %v459_v9, %v459_v9 }
 0x310   : > { %3078 = vmatprep.mubr.msk.bf16.mxu1 %vm761_vm5, %v729_v5  ;;  %v462_v11 = vpop.f32.mrb[2].mxu1 }
 0x311   : > { %v3053_v12 = vpop.f32.mrb[3].mxu1  ;;  %v4095_v13 = vpack.i.bf16 %v462_v11, %v459_v9  ;;  %v772_v48 = vsel %vm761_vm5, %v746_v47, 0 }
 0x313   : > { %v4097_v15 = vpop.f32.mrb[4].mxu0  ;;  %3383 = vrot.lane.b32.xlu1 %v4095_v13, %s3775_s22 }
 0x314   : > { %v3036_v17 = vpop.f32.mrb[5].mxu0  ;;  %v3392_v18 = vpack.i.bf16 %v4097_v15, %v4088_v4  ;;  %v730_v49 = vpack.c.bf16 %v4097_v15, %v4097_v15 }
 0x315   : > { %v4103_v19 = vpop.f32.mrb[6].mxu0 }
 0x316   : > { %v3037_v21 = vpop.f32.mrb[7].mxu0  ;;  %v4105_v23 = vpop.f32.mrb[4].mxu1 }
 0x317   : > { %v747_v24 = vpack.c.bf16 %v4105_v23, %v462_v11  ;;  %v3056_v26 = vpop.f32.mrb[5].mxu1  ;;  %v3387_v27 = vpack.i.bf16 %v4086_v0, %v4105_v23 }
 0x318   : > { %v470_v29 = vpop.f32.mrb[6].mxu1 }
 0x319   : > { %3388 = vrot.lane.b32.xlu1 %v3387_v27, %s3775_s22  ;;  %v3057_v30 = vpop.f32.mrb[7].mxu1  ;;  %v3402_v31 = vpack.i.bf16 %v4103_v19, %v470_v29  ;;  %v748_v58 = vpack.c.bf16 %v470_v29, %v470_v29  ;;  %v829_v61 = vsel %vm761_vm5, %v747_v24, 0 }
 0x31b   : > { %v4112_v32 = vpop.f32.mrb[8].mxu0 }
 0x31c   : > { %v731_v33 = vpack.c.bf16 %v4112_v32, %v4103_v19  ;;  %v3040_v34 = vpop.f32.mrb[9].mxu0  ;;  %v3452_v35 = vpack.i.bf16 %v4112_v32, %v4103_v19 }
 0x31d   : > { %v4118_v36 = vpop.f32.mrb[10].mxu0  ;;  %3393 = vrot.lane.b32.xlu1 %v3392_v18, %s3775_s22 }
 0x31e   : > { %v3041_v37 = vpop.f32.mrb[11].mxu0  ;;  %v3412_v38 = vpack.i.bf16 %v4118_v36, %v4112_v32  ;;  %v732_v9 = vpack.c.bf16 %v4118_v36, %v4118_v36 }
 0x321   : > { %3403 = vrot.lane.b32.xlu1 %v3402_v31, %s3775_s22 }
 0x323   : > { %v451_v39 = vpop.f32.mrb[12].mxu0 }
 0x324   : > { %v3048_v42 = vpop.f32.mrb[13].mxu0 }
 0x325   : > { %v454_v43 = vpop.f32.mrb[14].mxu0  ;;  %3413 = vrot.lane.b32.xlu1 %v3412_v38, %s3775_s22 }
 0x326   : > { %v745_v44 = vpack.c.bf16 %v454_v43, %v451_v39  ;;  %v3049_v45 = vpop.f32.mrb[15].mxu0  ;;  %v3377_v46 = vpack.i.bf16 %v454_v43, %v451_v39 }
 0x328   : > { %3378 = vrot.lane.b32.xlu0 %v3377_v46, %s3775_s22  ;;  %3280 = vmatprep.subr.msk.bf16.mxu1 %vm761_vm5, %v745_v44  ;;  %v769_v50 = vsel %vm761_vm5, %v745_v44, 0 }
 0x329   : > { %3075 = vmatpush3.bf16.xpose.msra.mxu1 %v769_v50  ;;  %3423 = vrot.lane.b32.xlu1 %v3392_v18, %s3776_s24 }
 0x32a   : > { %3281 = vmatprep.subr.msk.bf16.mxu1 %vm761_vm5, %v746_v47 }
 0x32b   : > { %v526_v40 = vpop.f32.mrb[16].mxu0 }
 0x32c   : > { %3398 = vrot.lane.b32.xlu0 %v3377_v46, %s3776_s24  ;;  %v3064_v51 = vpop.f32.mrb[17].mxu0 }
 0x32d   : > { %v529_v52 = vpop.f32.mrb[18].mxu0  ;;  %3433 = vrot.lane.b32.xlu1 %v3402_v31, %s3776_s24 }
 0x32e   : > { %v3065_v53 = vpop.f32.mrb[19].mxu0  ;;  %v3457_v54 = vpack.i.bf16 %v529_v52, %v526_v40  ;;  %v4132_v55 = vpack.c.bf16 %v529_v52, %v526_v40 }
 0x330   : > { %3408 = vrot.lane.b32.xlu0 %v4095_v13, %s3776_s24 }
 0x331   : > { %3077 = vmatpush3.bf16.xpose.msra.mxu1 %v772_v48  ;;  %3443 = vrot.lane.b32.xlu1 %v3412_v38, %s3776_s24 }
 0x332   : > { %3282 = vmatprep.subr.msk.bf16.mxu1 %vm761_vm5, %v747_v24 }
 0x333   : > { %v4139_v56 = vpop.f32.mrb[20].mxu0 }
 0x334   : > { %3418 = vrot.lane.b32.xlu0 %v3387_v27, %s3776_s24  ;;  %v3068_v41 = vpop.f32.mrb[21].mxu0 }
 0x335   : > { %v537_v57 = vpop.f32.mrb[22].mxu0  ;;  %3448 = vrot.lane.b32.xlu1 %v3447_v7, %s3777_s2  ;;  %v832_v7 = vsel %vm761_vm5, %v748_v58, 0 }
 0x336   : > { %v3069_v59 = vpop.f32.mrb[23].mxu0  ;;  %v3472_v60 = vpack.i.bf16 %v537_v57, %v4139_v56 }
 0x338   : > { %3428 = vrot.lane.b32.xlu0 %v3377_v46, %s3777_s2  ;;  %3079 = vmatmul.mubr.msk.bf16.vlgmr.msra.gmra.mrb[8].mxu1 %vm761_vm5, %v730_v49 }
 0x339   : > { %3083 = vmatpush3.bf16.xpose.msra.mxu1 %v829_v61  ;;  %3086 = vmatprep.mubr.msk.bf16.mxu1 %vm761_vm5, %v731_v33 }
 0x33a   : > { %661 = vrot.lane.b32.xlu1 %v470_v29, %s3777_s2  ;;  %3283 = vmatprep.subr.msk.bf16.mxu1 %vm761_vm5, %v748_v58 }
 0x33b   : > { %v542_v62 = vpop.f32.mrb[24].mxu0 }
 0x33c   : > { %3438 = vrot.lane.b32.xlu0 %v4095_v13, %s3777_s2  ;;  %v3072_v63 = vpop.f32.mrb[25].mxu0  ;;  %v4157_v0 = vpack.c.bf16 %v542_v62, %v537_v57  ;;  %v4159_v2 = vpack.i.bf16 %v542_v62, %v537_v57 }
 0x33d   : > { %v4161_v4 = vpop.f32.mrb[26].mxu0 }
 0x33e   : > { %601 = vrot.lane.b32.xlu1 %v4118_v36, %s3777_s2  ;;  %v3073_v5 = vpop.f32.mrb[27].mxu0  ;;  %v3477_v6 = vpack.i.bf16 %v4161_v4, %v542_v62 }
 0x340   : > { %659 = vrot.lane.b32.xlu0 %v4105_v23, %s3777_s2 }
 0x341   : > { %3085 = vmatpush3.bf16.xpose.msra.mxu1 %v832_v7 }
 0x342   : > { %3458 = vrot.lane.b32.xlu1 %v3457_v54, %s3775_s22 }
 0x344   : > { %595 = vrot.lane.b32.xlu0 %v4097_v15, %s3777_s2 }
 0x346   : > { %3468 = vrot.lane.b32.xlu1 %v3457_v54, %s3777_s2 }
 0x348   : > { %3453 = vrot.lane.b32.xlu0 %v3452_v35, %s3777_s2  ;;  %3087 = vmatmul.mubr.msk.bf16.vlgmr.msra.gmra.mrb[12].mxu1 %vm761_vm5, %v732_v9 }
 0x34a   : > { %697 = vrot.lane.b32.xlu1 %v4139_v56, %s3776_s24 }
 0x34c   : > { %3463 = vrot.lane.b32.xlu0 %v3457_v54, %s3776_s24 }
 0x34e   : > { %3478 = vrot.lane.b32.xlu1 %v3477_v6, %s3775_s22 }
 0x350   : > { %3473 = vrot.lane.b32.xlu0 %v3472_v60, %s3775_s22  ;;  %s2491_s22 = scalar_lea.vmem %s4845_s15, %s3769_s3 }
 0x385   : > { %v3384_v10 = vpop.permute.xlu1 %3383 }
 0x386   : > { %v3386_v12 = vunpack.i.h.bf16 %v3384_v10  ;;  %v3385_v33 = vunpack.i.l.bf16 %v3384_v10 }
 0x388   : > { %v750_v44 = vpack.c.bf16 %v3385_v33, %v3385_v33 }
 0x38a   : > { %v892_v57 = vsel %vm761_vm5, %v750_v44, 0 }
 0x38b   : > { %v3389_v11 = vpop.permute.xlu1 %3388 }
 0x38c   : > { %v3390_v13 = vunpack.i.l.bf16 %v3389_v11  ;;  %v3391_v18 = vunpack.i.h.bf16 %v3389_v11 }
 0x38e   : > { %v751_v15 = vpack.c.bf16 %v3390_v13, %v3386_v12 }
 0x38f   : > { %v4185_v17 = vpop.permute.xlu1 %3393 }
 0x390   : > { %v3395_v19 = vunpack.i.l.bf16 %v4185_v17  ;;  %3286 = vmatprep.subr.msk.bf16.mxu1 %vm761_vm5, %v751_v15  ;;  %v949_v21 = vsel %vm761_vm5, %v751_v15, 0  ;;  %v3396_v61 = vunpack.i.h.bf16 %v4185_v17 }
 0x391   : > { %3099 = vmatpush3.bf16.xpose.msra.mxu1 %v949_v21 }
 0x392   : > { %v733_v23 = vpack.c.bf16 %v3395_v19, %v3391_v18  ;;  %v734_v12 = vpack.c.bf16 %v3396_v61, %v3396_v61 }
 0x393   : > { %v3404_v24 = vpop.permute.xlu1 %3403 }
 0x394   : > { %v3405_v26 = vunpack.i.l.bf16 %v3404_v24  ;;  %3094 = vmatprep.mubr.msk.bf16.mxu0 %vm761_vm5, %v733_v23  ;;  %v3406_v30 = vunpack.i.h.bf16 %v3404_v24 }
 0x396   : > { %v752_v27 = vpack.c.bf16 %v3405_v26, %v3405_v26 }
 0x397   : > { %v3414_v29 = vpop.permute.xlu1 %3413 }
 0x398   : > { %v3415_v31 = vunpack.i.l.bf16 %v3414_v29  ;;  %3287 = vmatprep.subr.msk.bf16.mxu1 %vm761_vm5, %v752_v27  ;;  %v952_v32 = vsel %vm761_vm5, %v752_v27, 0  ;;  %v3416_v35 = vunpack.i.h.bf16 %v3414_v29 }
 0x399   : > { %3101 = vmatpush3.bf16.xpose.msra.mxu1 %v952_v32 }
 0x39a   : > { %v3379_v34 = vpop.permute.xlu0 %3378  ;;  %v735_v36 = vpack.c.bf16 %v3415_v31, %v3406_v30  ;;  %v736_v45 = vpack.c.bf16 %v3416_v35, %v3416_v35 }
 0x39b   : > { %v3381_v37 = vunpack.i.h.bf16 %v3379_v34  ;;  %v3380_v38 = vunpack.i.l.bf16 %v3379_v34  ;;  %v4193_v39 = vpop.permute.xlu1 %3423 }
 0x39c   : > { %3102 = vmatprep.mubr.msk.bf16.mxu1 %vm761_vm5, %v735_v36  ;;  %v3425_v11 = vunpack.i.l.bf16 %v4193_v39  ;;  %v3426_v35 = vunpack.i.h.bf16 %v4193_v39 }
 0x39d   : > { %v749_v42 = vpack.c.bf16 %v3381_v37, %v3380_v38 }
 0x39e   : > { %v3399_v43 = vpop.permute.xlu0 %3398 }
 0x39f   : > { %3284 = vmatprep.subr.msk.bf16.mxu0 %vm761_vm5, %v749_v42  ;;  %v889_v46 = vsel %vm761_vm5, %v749_v42, 0  ;;  %v3434_v47 = vpop.permute.xlu1 %3433  ;;  %v3401_v50 = vunpack.i.h.bf16 %v3399_v43  ;;  %v3400_v40 = vunpack.i.l.bf16 %v3399_v43 }
 0x3a0   : > { %3091 = vmatpush3.bf16.xpose.msra.mxu0 %v889_v46  ;;  %3103 = vmatmul.mubr.msk.bf16.vlgmr.msra.gmra.mrb[16].mxu1 %vm761_vm5, %v736_v45  ;;  %v3436_v53 = vunpack.i.h.bf16 %v3434_v47  ;;  %v3435_v49 = vunpack.i.l.bf16 %v3434_v47 }
 0x3a1   : > { %3285 = vmatprep.subr.msk.bf16.mxu0 %vm761_vm5, %v750_v44  ;;  %v753_v48 = vpack.c.bf16 %v3401_v50, %v3400_v40  ;;  %v738_v40 = vpack.c.bf16 %v3426_v35, %v3426_v35 }
 0x3a2   : > { %v3409_v51 = vpop.permute.xlu0 %3408  ;;  %v756_v7 = vpack.c.bf16 %v3435_v49, %v3435_v49 }
 0x3a3   : > { %v3444_v52 = vpop.permute.xlu1 %3443  ;;  %v3411_v59 = vunpack.i.h.bf16 %v3409_v51  ;;  %v3410_v9 = vunpack.i.l.bf16 %v3409_v51  ;;  %v1009_v18 = vsel %vm761_vm5, %v753_v48, 0 }
 0x3a4   : > { %v3445_v54 = vunpack.i.l.bf16 %v3444_v52  ;;  %v1072_v29 = vsel %vm761_vm5, %v756_v7, 0  ;;  %v3446_v30 = vunpack.i.h.bf16 %v3444_v52 }
 0x3a5   : > { %v754_v17 = vpack.c.bf16 %v3410_v9, %v3410_v9 }
 0x3a6   : > { %v3419_v41 = vpop.permute.xlu0 %3418  ;;  %v739_v60 = vpack.c.bf16 %v3445_v54, %v3436_v53  ;;  %v740_v36 = vpack.c.bf16 %v3446_v30, %v3446_v30 }
 0x3a7   : > { %v3420_v58 = vunpack.i.l.bf16 %v3419_v41  ;;  %v3421_v63 = vunpack.i.h.bf16 %v3419_v41  ;;  %v3449_v5 = vpop.permute.xlu1 %3448  ;;  %v1012_v34 = vsel %vm761_vm5, %v754_v17, 0 }
 0x3a8   : > { %3093 = vmatpush3.bf16.xpose.msra.mxu0 %v892_v57  ;;  %3118 = vmatprep.mubr.msk.bf16.mxu1 %vm761_vm5, %v739_v60  ;;  %v3451_v37 = vunpack.i.h.bf16 %v3449_v5  ;;  %v3450_v38 = vunpack.i.l.bf16 %v3449_v5 }
 0x3a9   : > { %v755_v62 = vpack.c.bf16 %v3420_v58, %v3411_v59  ;;  %3288 = vmatprep.subr.msk.bf16.mxu0 %vm761_vm5, %v753_v48  ;;  %v737_v13 = vpack.c.bf16 %v3425_v11, %v3421_v63 }
 0x3aa   : > { %v3429_v6 = vpop.permute.xlu0 %3428  ;;  %v741_v39 = vpack.c.bf16 %v3451_v37, %v3450_v38 }
 0x3ab   : > { %3290 = vmatprep.subr.msk.bf16.mxu1 %vm761_vm5, %v755_v62  ;;  %v1069_v10 = vsel %vm761_vm5, %v755_v62, 0  ;;  %v3431_v24 = vunpack.i.h.bf16 %v3429_v6  ;;  %v3430_v26 = vunpack.i.l.bf16 %v3429_v6 }
 0x3ac   : > { %3115 = vmatpush3.bf16.xpose.msra.mxu1 %v1069_v10  ;;  %v662_v19 = vpop.permute.xlu1 %661 }
 0x3ad   : > { %3291 = vmatprep.subr.msk.bf16.mxu1 %vm761_vm5, %v756_v7  ;;  %v757_v33 = vpack.c.bf16 %v3431_v24, %v3430_v26  ;;  %v760_v42 = vpack.c.bf16 %v662_v19, %v662_v19  ;;  %v1574_v7 = vpack.c.bf16 %v4139_v56, %v4139_v56 }
 0x3ae   : > { %v3439_v15 = vpop.permute.xlu0 %3438 }
 0x3af   : > { %3095 = vmatmul.mubr.msk.bf16.vlgmr.msra.gmra.mrb[28].mxu0 %vm761_vm5, %v734_v12  ;;  %v3441_v21 = vunpack.i.h.bf16 %v3439_v15  ;;  %v3440_v44 = vunpack.i.l.bf16 %v3439_v15  ;;  %v1129_v41 = vsel %vm761_vm5, %v757_v33, 0  ;;  %v1192_v57 = vsel %vm761_vm5, %v760_v42, 0 }
 0x3b0   : > { %3107 = vmatpush3.bf16.xpose.msra.mxu0 %v1009_v18  ;;  %3110 = vmatprep.mubr.msk.bf16.mxu0 %vm761_vm5, %v737_v13  ;;  %v602_v31 = vpop.permute.xlu1 %601  ;;  %v1597_v11 = vsel %vm1595_vm6, %v1574_v7, 0 }
 0x3b1   : > { %3289 = vmatprep.subr.msk.bf16.mxu0 %vm761_vm5, %v754_v17  ;;  %v758_v53 = vpack.c.bf16 %v3440_v44, %v3440_v44  ;;  %v744_v61 = vpack.c.bf16 %v602_v31, %v602_v31 }
 0x3b2   : > { %v660_v23 = vpop.permute.xlu0 %659 }
 0x3b3   : > { %v759_v27 = vpack.c.bf16 %v660_v23, %v3441_v21  ;;  %v1132_v58 = vsel %vm761_vm5, %v758_v53, 0 }
 0x3b4   : > { %3117 = vmatpush3.bf16.xpose.msra.mxu1 %v1072_v29  ;;  %v3459_v50 = vpop.permute.xlu1 %3458 }
 0x3b5   : > { %3294 = vmatprep.subr.msk.bf16.mxu1 %vm761_vm5, %v759_v27  ;;  %v1189_v45 = vsel %vm761_vm5, %v759_v27, 0  ;;  %v3461_v54 = vunpack.i.h.bf16 %v3459_v50  ;;  %v3460_v48 = vunpack.i.l.bf16 %v3459_v50 }
 0x3b6   : > { %v596_v32 = vpop.permute.xlu0 %595 }
 0x3b7   : > { %v1577_v49 = vpack.c.bf16 %v3461_v54, %v3460_v48  ;;  %v742_v6 = vpack.c.bf16 %v596_v32, %v596_v32 }
 0x3b8   : > { %3109 = vmatpush3.bf16.xpose.msra.mxu0 %v1012_v34 }
 0x3b9   : > { %3292 = vmatprep.subr.msk.bf16.mxu0 %vm761_vm5, %v757_v33 }
 0x3ba   : > { %v3454_v43 = vpop.permute.xlu0 %3453 }
 0x3bb   : > { %v3456_v46 = vunpack.i.h.bf16 %v3454_v43  ;;  %v3455_v47 = vunpack.i.l.bf16 %v3454_v43  ;;  %3119 = vmatmul.mubr.msk.bf16.vlgmr.msra.gmra.mrb[20].mxu1 %vm761_vm5, %v740_v36 }
 0x3bc   : > { %3131 = vmatpush3.bf16.xpose.msra.mxu1 %v1189_v45 }
 0x3bd   : > { %v743_v51 = vpack.c.bf16 %v3456_v46, %v3455_v47  ;;  %3295 = vmatprep.subr.msk.bf16.mxu1 %vm761_vm5, %v760_v42 }
 0x3be   : > { %v3464_v52 = vpop.permute.xlu0 %3463 }
 0x3bf   : > { %3111 = vmatmul.mubr.msk.bf16.vlgmr.msra.gmra.mrb[32].mxu0 %vm761_vm5, %v738_v40  ;;  %3134 = vmatprep.mubr.msk.bf16.mxu1 %vm761_vm5, %v743_v51  ;;  %v3466_v62 = vunpack.i.h.bf16 %v3464_v52  ;;  %v3465_v63 = vunpack.i.l.bf16 %v3464_v52 }
 0x3c0   : > { %3123 = vmatpush3.bf16.xpose.msra.mxu0 %v1129_v41  ;;  %3126 = vmatprep.mubr.msk.bf16.mxu0 %vm761_vm5, %v741_v39 }
 0x3c1   : > { %3293 = vmatprep.subr.msk.bf16.mxu0 %vm761_vm5, %v758_v53  ;;  %v4235_v9 = vpack.c.bf16 %v3466_v62, %v3465_v63 }
 0x3c2   : > { %v4226_v59 = vpop.permute.xlu0 %3473 }
 0x3c3   : > { %v3475_v60 = vunpack.i.l.bf16 %v4226_v59 }
 0x3c4   : > { %3133 = vmatpush3.bf16.xpose.msra.mxu1 %v1192_v57 }
 0x3c5   : > { %3154 = vmatprep.subr.bf16.mxu1 %v1577_v49  ;;  %v1578_v5 = vpack.c.bf16 %v3475_v60, %v3475_v60 }
 0x3c7   : > { %v1711_v10 = vsel %vm1595_vm6, %v1578_v5, 0 }
 0x3c8   : > { %3125 = vmatpush3.bf16.xpose.msra.mxu0 %v1132_v58 }
 0x3c9   : > { %3138 = vmatprep.subr.bf16.mxu0 %v4132_v55 }
 0x3cb   : > { %3135 = vmatmul.mubr.msk.bf16.vlgmr.msra.gmra.mrb[24].mxu1 %vm761_vm5, %v744_v61 }
 0x3cc   : > { %3155 = vmatpush3.bf16.msra.mxu1 %v1577_v49 }
 0x3cd   : > { %3298 = vmatprep.subr.msk.bf16.mxu1 %vm1595_vm6, %v1578_v5 }
 0x3cf   : > { %3127 = vmatmul.mubr.msk.bf16.vlgmr.msra.gmra.mrb[36].mxu0 %vm761_vm5, %v742_v6 }
 0x3d0   : > { %3139 = vmatpush3.bf16.msra.mxu0 %v4132_v55  ;;  %3157 = vmatpush3.bf16.msra.mxu1 %v1711_v10 }
 0x3d1   : > { %3296 = vmatprep.subr.msk.bf16.mxu0 %vm1595_vm6, %v1574_v7  ;;  %3170 = vmatprep.subr.bf16.mxu1 %v4235_v9 }
 0x3d4   : > { %3141 = vmatpush3.bf16.msra.mxu0 %v1597_v11 }
 0x3d5   : > { %3146 = vmatprep.subr.bf16.mxu0 %v4157_v0 }
 0x40b   : > { %v3080_v12 = vpop.f32.mrb[8].mxu1 }
 0x40c   : > { %v1244_v13 = vmul.f32 0.35355338, %v3080_v12  ;;  %v808_v15 = vpop.f32.mrb[9].mxu1 }
 0x40d   : > { %v1242_v17 = vmul.f32 0.35355338, %v808_v15  ;;  %v3081_v18 = vpop.f32.mrb[10].mxu1 }
 0x40e   : > { %v4246_v19 = vsel %vm190_vm2, %v1244_v13, -1e+30  ;;  %v811_v55 = vpop.f32.mrb[11].mxu1 }
 0x40f   : > { %v1243_v21 = vmul.f32 0.35355338, %v811_v55  ;;  %v1299_v23 = vsel %vm1292_vm7, %v4246_v19, -inf  ;;  %v4252_v24 = vsel %vm190_vm2, %v1242_v17, -1e+30 }
 0x410   : > { %1300 = vmax.xlane.f32.xlu0 %v1299_v23  ;;  %v1293_v29 = vsel %vm1292_vm7, %v4252_v24, -inf }
 0x411   : > { %v4256_v26 = vsel %vm190_vm2, %v1243_v21, -1e+30 }
 0x412   : > { %v1296_v27 = vsel %vm1292_vm7, %v4256_v26, -inf }
 0x413   : > { %1297 = vmax.xlane.f32.xlu1 %v1296_v27 }
 0x414   : > { %1294 = vmax.xlane.f32.xlu0 %v1293_v29 }
 0x41b   : > { %v3088_v30 = vpop.f32.mrb[12].mxu1 }
 0x41c   : > { %v1247_v31 = vmul.f32 0.35355338, %v3088_v30  ;;  %v868_v32 = vpop.f32.mrb[13].mxu1 }
 0x41d   : > { %v1245_v33 = vmul.f32 0.35355338, %v868_v32  ;;  %v3089_v34 = vpop.f32.mrb[14].mxu1 }
 0x41e   : > { %v4264_v35 = vsel %vm190_vm2, %v1247_v31, -1e+30  ;;  %v871_v36 = vpop.f32.mrb[15].mxu1 }
 0x41f   : > { %v1246_v37 = vmul.f32 0.35355338, %v871_v36  ;;  %v1308_v38 = vsel %vm1292_vm7, %v4264_v35, -inf  ;;  %v4270_v42 = vsel %vm190_vm2, %v1245_v33, -1e+30 }
 0x420   : > { %1309 = vmax.xlane.f32.xlu0 %v1308_v38  ;;  %v1302_v45 = vsel %vm1292_vm7, %v4270_v42, -inf }
 0x421   : > { %v4274_v43 = vsel %vm190_vm2, %v1246_v37, -1e+30 }
 0x422   : > { %v1305_v44 = vsel %vm1292_vm7, %v4274_v43, -inf }
 0x423   : > { %1306 = vmax.xlane.f32.xlu1 %v1305_v44 }
 0x424   : > { %1303 = vmax.xlane.f32.xlu0 %v1302_v45 }
 0x473   : > { %v3104_v46 = vpop.f32.mrb[16].mxu1 }
 0x474   : > { %v1253_v47 = vmul.f32 0.35355338, %v3104_v46  ;;  %v988_v50 = vpop.f32.mrb[17].mxu1 }
 0x475   : > { %v1251_v40 = vmul.f32 0.35355338, %v988_v50  ;;  %v3105_v51 = vpop.f32.mrb[18].mxu1 }
 0x476   : > { %v4282_v39 = vsel %vm190_vm2, %v1253_v47, -1e+30  ;;  %v991_v52 = vpop.f32.mrb[19].mxu1 }
 0x477   : > { %v1252_v53 = vmul.f32 0.35355338, %v991_v52  ;;  %v1326_v54 = vsel %vm1292_vm7, %v4282_v39, -inf  ;;  %v4288_v48 = vsel %vm190_vm2, %v1251_v40, -1e+30 }
 0x478   : > { %1327 = vmax.xlane.f32.xlu0 %v1326_v54  ;;  %v1320_v49 = vsel %vm1292_vm7, %v4288_v48, -inf }
 0x479   : > { %v4292_v41 = vsel %vm190_vm2, %v1252_v53, -1e+30 }
 0x47a   : > { %v1323_v57 = vsel %vm1292_vm7, %v4292_v41, -inf }
 0x47b   : > { %1324 = vmax.xlane.f32.xlu1 %v1323_v57 }
 0x47c   : > { %1321 = vmax.xlane.f32.xlu0 %v1320_v49 }
 0x482   : > { %v3096_v60 = vpop.f32.mrb[28].mxu0 }
 0x483   : > { %v1250_v58 = vmul.f32 0.35355338, %v3096_v60  ;;  %v928_v61 = vpop.f32.mrb[29].mxu0 }
 0x484   : > { %v3097_v62 = vpop.f32.mrb[30].mxu0  ;;  %v1248_v23 = vmul.f32 0.35355338, %v928_v61 }
 0x485   : > { %v4300_v63 = vsel %vm190_vm2, %v1250_v58, -1e+30  ;;  %v931_v5 = vpop.f32.mrb[31].mxu0 }
 0x486   : > { %v1317_v6 = vsel %vm1292_vm7, %v4300_v63, -inf  ;;  %v4324_v36 = vsel %vm190_vm2, %v1248_v23, -1e+30  ;;  %v1249_v37 = vmul.f32 0.35355338, %v931_v5 }
 0x487   : > { %1318 = vmax.xlane.f32.xlu1 %v1317_v6  ;;  %v1311_v38 = vsel %vm1292_vm7, %v4324_v36, -inf }
 0x488   : > { %v4330_v44 = vsel %vm190_vm2, %v1249_v37, -1e+30 }
 0x489   : > { %v1314_v46 = vsel %vm1292_vm7, %v4330_v44, -inf }
 0x48e   : > { %v3120_v7 = vpop.f32.mrb[20].mxu1 }
 0x48f   : > { %v1259_v10 = vmul.f32 0.35355338, %v3120_v7  ;;  %v1108_v11 = vpop.f32.mrb[21].mxu1 }
 0x490   : > { %v1257_v12 = vmul.f32 0.35355338, %v1108_v11  ;;  %v3121_v13 = vpop.f32.mrb[22].mxu1 }
 0x491   : > { %v4306_v15 = vsel %vm190_vm2, %v1259_v10, -1e+30  ;;  %v1111_v17 = vpop.f32.mrb[23].mxu1 }
 0x492   : > { %v1258_v18 = vmul.f32 0.35355338, %v1111_v17  ;;  %v3112_v55 = vpop.f32.mrb[32].mxu0  ;;  %v1344_v21 = vsel %vm1292_vm7, %v4306_v15, -inf  ;;  %v4312_v27 = vsel %vm190_vm2, %v1257_v12, -1e+30 }
 0x493   : > { %1345 = vmax.xlane.f32.xlu0 %v1344_v21  ;;  %v1048_v29 = vpop.f32.mrb[33].mxu0  ;;  %v1338_v34 = vsel %vm1292_vm7, %v4312_v27, -inf  ;;  %v1256_v61 = vmul.f32 0.35355338, %v3112_v55 }
 0x494   : > { %v4316_v30 = vsel %vm190_vm2, %v1258_v18, -1e+30  ;;  %v3113_v31 = vpop.f32.mrb[34].mxu0  ;;  %v1254_v18 = vmul.f32 0.35355338, %v1048_v29 }
 0x495   : > { %v1051_v32 = vpop.f32.mrb[35].mxu0  ;;  %v1341_v33 = vsel %vm1292_vm7, %v4316_v30, -inf  ;;  %v4358_v17 = vsel %vm190_vm2, %v1256_v61, -1e+30 }
 0x496   : > { %1342 = vmax.xlane.f32.xlu1 %v1341_v33  ;;  %v1255_v54 = vmul.f32 0.35355338, %v1051_v32  ;;  %v1335_v23 = vsel %vm1292_vm7, %v4358_v17, -inf  ;;  %v4370_v31 = vsel %vm190_vm2, %v1254_v18, -1e+30 }
 0x497   : > { %1339 = vmax.xlane.f32.xlu0 %v1338_v34  ;;  %v1329_v33 = vsel %vm1292_vm7, %v4370_v31, -inf }
 0x498   : > { %v4352_v10 = vsel %vm190_vm2, %v1255_v54, -1e+30 }
 0x499   : > { %v1332_v55 = vsel %vm1292_vm7, %v4352_v10, -inf }
 0x49b   : > { %1312 = vmax.xlane.f32.xlu0 %v1311_v38 }
 0x49e   : > { %v3136_v45 = vpop.f32.mrb[24].mxu1 }
 0x49f   : > { %v1265_v47 = vmul.f32 0.35355338, %v3136_v45  ;;  %v1228_v50 = vpop.f32.mrb[25].mxu1  ;;  %1315 = vmax.xlane.f32.xlu0 %v1314_v46 }
 0x4a0   : > { %v1263_v40 = vmul.f32 0.35355338, %v1228_v50  ;;  %v3137_v51 = vpop.f32.mrb[26].mxu1  ;;  %v1301_v50 = vpop.xlane.xlu0 %1300 }
 0x4a1   : > { %v4336_v52 = vsel %vm190_vm2, %v1265_v47, -1e+30  ;;  %v1231_v53 = vpop.f32.mrb[27].mxu1  ;;  %v4388_v47 = vpop.permute.xlu1 %3468 }
 0x4a2   : > { %v1264_v57 = vmul.f32 0.35355338, %v1231_v53  ;;  %v3128_v49 = vpop.f32.mrb[36].mxu0  ;;  %v1362_v60 = vsel %vm1292_vm7, %v4336_v52, -inf  ;;  %v4342_v62 = vsel %vm190_vm2, %v1263_v40, -1e+30  ;;  %v1367_v53 = vsub.f32 %v4246_v19, %v1301_v50 }
 0x4a3   : > { %v1168_v58 = vpop.f32.mrb[37].mxu0  ;;  %1363 = vmax.xlane.f32.xlu1 %v1362_v60  ;;  %v1356_v13 = vsel %vm1292_vm7, %v4342_v62, -inf  ;;  %v1262_v32 = vmul.f32 0.35355338, %v3128_v49 }
 0x4a4   : > { %v4346_v5 = vsel %vm190_vm2, %v1264_v57, -1e+30  ;;  %v3129_v6 = vpop.f32.mrb[38].mxu0  ;;  %v1260_v37 = vmul.f32 0.35355338, %v1168_v58  ;;  %v1295_v51 = vpop.xlane.xlu0 %1294 }
 0x4a5   : > { %v1359_v7 = vsel %vm1292_vm7, %v4346_v5, -inf  ;;  %v1171_v11 = vpop.f32.mrb[39].mxu0  ;;  %v4378_v34 = vsel %vm190_vm2, %v1262_v32, -1e+30  ;;  %v4394_v40 = vpop.permute.xlu1 %697  ;;  %v1393_v49 = vmul.f32 1.442695, %v1367_v53  ;;  %v1365_v60 = vsub.f32 %v4252_v24, %v1295_v51 }
 0x4a6   : > { %1360 = vmax.xlane.f32.xlu0 %v1359_v7  ;;  %v1261_v12 = vmul.f32 0.35355338, %v1171_v11  ;;  %v1353_v38 = vsel %vm1292_vm7, %v4378_v34, -inf  ;;  %v4384_v45 = vsel %vm190_vm2, %v1260_v37, -1e+30 }
 0x4a7   : > { %1357 = vmax.xlane.f32.xlu1 %v1356_v13  ;;  %v1347_v46 = vsel %vm1292_vm7, %v4384_v45, -inf  ;;  %3567 = vpow2.f32 %v1393_v49  ;;  %v1389_v61 = vmul.f32 1.442695, %v1365_v60 }
 0x4a8   : > { %v4364_v21 = vsel %vm190_vm2, %v1261_v12, -1e+30 }
 0x4a9   : > { %v1350_v29 = vsel %vm1292_vm7, %v4364_v21, -inf  ;;  %v4397_v54 = vpop.permute.xlu1 %3478  ;;  %3569 = vpow2.f32 %v1389_v61 }
 0x4aa   : > { %1333 = vmax.xlane.f32.xlu0 %v1332_v55 }
 0x4ab   : > { %1336 = vmax.xlane.f32.xlu1 %v1335_v23 }
 0x4ad   : > { %v1310_v57 = vpop.xlane.xlu0 %1309  ;;  %v1298_v58 = vpop.xlane.xlu1 %1297 }
 0x4ae   : > { %1351 = vmax.xlane.f32.xlu0 %v1350_v29  ;;  %v1370_v6 = vsub.f32 %v4264_v35, %v1310_v57  ;;  %v1366_v11 = vsub.f32 %v4256_v26, %v1298_v58 }
 0x4af   : > { %1330 = vmax.xlane.f32.xlu1 %v1329_v33 }
 0x4b0   : > { %v1399_v12 = vmul.f32 1.442695, %v1370_v6  ;;  %v1391_v19 = vmul.f32 1.442695, %v1366_v11 }
 0x4b1   : > { %v1304_v7 = vpop.xlane.xlu0 %1303  ;;  %v4404_v23 = vpop.eup %3567 }
 0x4b2   : > { %v1368_v13 = vsub.f32 %v4270_v42, %v1304_v7  ;;  %3571 = vpow2.f32 %v1399_v12  ;;  %v1443_v35 = vsel %vm1292_vm7, %v4404_v23, 0.0 }
 0x4b3   : > { %1354 = vmax.xlane.f32.xlu1 %v1353_v38  ;;  %3573 = vpow2.f32 %v1391_v19  ;;  %v4408_v32 = vpop.eup %3569 }
 0x4b4   : > { %v1395_v55 = vmul.f32 1.442695, %v1368_v13  ;;  %v1437_v26 = vsel %vm1292_vm7, %v4408_v32, 0.0 }
 0x4b6   : > { %3575 = vpow2.f32 %v1395_v55 }
 0x4b7   : > { %1348 = vmax.xlane.f32.xlu1 %v1347_v46 }
 0x4bc   : > { %v4412_v42 = vpop.eup %3571 }
 0x4bd   : > { %v1452_v29 = vsel %vm1292_vm7, %v4412_v42, 0.0 }
 0x4c4   : > { %3483 = vrot.lane.b32.xlu0 %v4159_v2, %s3776_s24 }
 0x4c8   : > { %715 = vrot.lane.b32.xlu1 %v4139_v56, %s3777_s2  ;;  %v1307_v56 = vpop.xlane.xlu1 %1306 }
 0x4c9   : > { %v1369_v18 = vsub.f32 %v4274_v43, %v1307_v56  ;;  %v4414_v43 = vpop.eup %3573 }
 0x4ca   : > { %v4418_v33 = vpop.eup %3575  ;;  %v1440_v37 = vsel %vm1292_vm7, %v4414_v43, 0.0 }
 0x4cb   : > { %v1397_v24 = vmul.f32 1.442695, %v1369_v18  ;;  %v1446_v46 = vsel %vm1292_vm7, %v4418_v33, 0.0 }
 0x4cd   : > { %3577 = vpow2.f32 %v1397_v24 }
 0x4d7   : > { %v4422_v38 = vpop.eup %3577 }
 0x4d8   : > { %v1449_v50 = vsel %vm1292_vm7, %v4422_v38, 0.0 }
 0x4e3   : > { %1444 = vadd.xlane.f32.xlu0 %v1443_v35 }
 0x4e7   : > { %1438 = vadd.xlane.f32.xlu0 %v1437_v26 }
 0x4eb   : > { %1453 = vadd.xlane.f32.xlu0 %v1452_v29 }
 0x4ec   : > { %1441 = vadd.xlane.f32.xlu1 %v1440_v37 }
 0x4ef   : > { %1447 = vadd.xlane.f32.xlu0 %v1446_v46 }
 0x4f0   : > { %1450 = vadd.xlane.f32.xlu1 %v1449_v50 }
 0x505   : > { %v1328_v51 = vpop.xlane.xlu0 %1327 }
 0x506   : > { %v1376_v53 = vsub.f32 %v4282_v39, %v1328_v51 }
 0x508   : > { %v1411_v57 = vmul.f32 1.442695, %v1376_v53  ;;  %v1325_v49 = vpop.xlane.xlu1 %1324 }
 0x509   : > { %v1375_v60 = vsub.f32 %v4292_v41, %v1325_v49  ;;  %v1322_v58 = vpop.xlane.xlu0 %1321 }
 0x50a   : > { %3579 = vpow2.f32 %v1411_v57  ;;  %v1374_v61 = vsub.f32 %v4288_v48, %v1322_v58 }
 0x50b   : > { %v1409_v6 = vmul.f32 1.442695, %v1375_v60 }
 0x50c   : > { %v1407_v7 = vmul.f32 1.442695, %v1374_v61 }
 0x50d   : > { %3581 = vpow2.f32 %v1409_v6 }
 0x50e   : > { %3583 = vpow2.f32 %v1407_v7 }
 0x514   : > { %v1319_v11 = vpop.xlane.xlu1 %1318  ;;  %v4431_v56 = vpop.eup %3579 }
 0x515   : > { %v1373_v12 = vsub.f32 %v4300_v63, %v1319_v11  ;;  %v1470_v39 = vsel %vm1292_vm7, %v4431_v56, 0.0 }
 0x516   : > { %1471 = vadd.xlane.f32.xlu0 %v1470_v39 }
 0x517   : > { %v1405_v13 = vmul.f32 1.442695, %v1373_v12  ;;  %v4436_v19 = vpop.eup %3581 }
 0x518   : > { %v4438_v41 = vpop.eup %3583  ;;  %v1467_v48 = vsel %vm1292_vm7, %v4436_v19, 0.0 }
 0x519   : > { %3585 = vpow2.f32 %v1405_v13  ;;  %1468 = vadd.xlane.f32.xlu1 %v1467_v48  ;;  %v1464_v18 = vsel %vm1292_vm7, %v4438_v41, 0.0 }
 0x51a   : > { %1465 = vadd.xlane.f32.xlu0 %v1464_v18 }
 0x520   : > { %v1346_v55 = vpop.xlane.xlu0 %1345 }
 0x521   : > { %v1382_v63 = vsub.f32 %v4306_v15, %v1346_v55 }
 0x523   : > { %v4445_v24 = vpop.eup %3585  ;;  %v1423_v35 = vmul.f32 1.442695, %v1382_v63  ;;  %v1343_v26 = vpop.xlane.xlu1 %1342 }
 0x524   : > { %v1340_v29 = vpop.xlane.xlu0 %1339  ;;  %v1461_v37 = vsel %vm1292_vm7, %v4445_v24, 0.0  ;;  %v1381_v50 = vsub.f32 %v4316_v30, %v1343_v26 }
 0x525   : > { %3587 = vpow2.f32 %v1423_v35  ;;  %v1380_v46 = vsub.f32 %v4312_v27, %v1340_v29  ;;  %1462 = vadd.xlane.f32.xlu1 %v1461_v37 }
 0x526   : > { %v1421_v15 = vmul.f32 1.442695, %v1381_v50 }
 0x527   : > { %v1419_v51 = vmul.f32 1.442695, %v1380_v46 }
 0x528   : > { %v1313_v53 = vpop.xlane.xlu0 %1312 }
 0x529   : > { %3589 = vpow2.f32 %v1419_v51  ;;  %v1371_v57 = vsub.f32 %v4324_v36, %v1313_v53 }
 0x52b   : > { %v1401_v49 = vmul.f32 1.442695, %v1371_v57 }
 0x52c   : > { %v1316_v60 = vpop.xlane.xlu0 %1315 }
 0x52d   : > { %3591 = vpow2.f32 %v1401_v49  ;;  %v1372_v58 = vsub.f32 %v4330_v44, %v1316_v60 }
 0x52e   : > { %3593 = vpow2.f32 %v1421_v15 }
 0x52f   : > { %v4453_v61 = vpop.eup %3587  ;;  %v1403_v6 = vmul.f32 1.442695, %v1372_v58 }
 0x530   : > { %v1488_v27 = vsel %vm1292_vm7, %v4453_v61, 0.0  ;;  %v1364_v30 = vpop.xlane.xlu1 %1363 }
 0x531   : > { %3595 = vpow2.f32 %v1403_v6  ;;  %1489 = vadd.xlane.f32.xlu0 %v1488_v27  ;;  %v1388_v7 = vsub.f32 %v4336_v52, %v1364_v30 }
 0x533   : > { %v4458_v11 = vpop.eup %3589  ;;  %v1361_v36 = vpop.xlane.xlu0 %1360  ;;  %v1435_v12 = vmul.f32 1.442695, %v1388_v7 }
 0x534   : > { %v1387_v39 = vsub.f32 %v4346_v5, %v1361_v36  ;;  %v1482_v44 = vsel %vm1292_vm7, %v4458_v11, 0.0  ;;  %v1358_v13 = vpop.xlane.xlu1 %1357 }
 0x535   : > { %1483 = vadd.xlane.f32.xlu0 %v1482_v44  ;;  %3597 = vpow2.f32 %v1435_v12  ;;  %v1386_v18 = vsub.f32 %v4342_v62, %v1358_v13 }
 0x536   : > { %v1433_v48 = vmul.f32 1.442695, %v1387_v39 }
 0x537   : > { %v4464_v55 = vpop.eup %3591  ;;  %v1334_v63 = vpop.xlane.xlu0 %1333  ;;  %v1431_v52 = vmul.f32 1.442695, %v1386_v18 }
 0x538   : > { %v4466_v35 = vpop.eup %3593  ;;  %3599 = vpow2.f32 %v1433_v48  ;;  %v1378_v26 = vsub.f32 %v4352_v10, %v1334_v63  ;;  %v1455_v5 = vsel %vm1292_vm7, %v4464_v55, 0.0  ;;  %v1337_v29 = vpop.xlane.xlu1 %1336 }
 0x539   : > { %1456 = vadd.xlane.f32.xlu1 %v1455_v5  ;;  %3601 = vpow2.f32 %v1431_v52  ;;  %v1379_v46 = vsub.f32 %v4358_v17, %v1337_v29  ;;  %v1485_v51 = vsel %vm1292_vm7, %v4466_v35, 0.0 }
 0x53a   : > { %v1415_v37 = vmul.f32 1.442695, %v1378_v26 }
 0x53b   : > { %v4472_v50 = vpop.eup %3595  ;;  %v1352_v62 = vpop.xlane.xlu0 %1351  ;;  %v1417_v53 = vmul.f32 1.442695, %v1379_v46 }
 0x53c   : > { %3603 = vpow2.f32 %v1415_v37  ;;  %v1384_v57 = vsub.f32 %v4364_v21, %v1352_v62  ;;  %v1458_v10 = vsel %vm1292_vm7, %v4472_v50, 0.0  ;;  %v1331_v15 = vpop.xlane.xlu1 %1330 }
 0x53d   : > { %1486 = vadd.xlane.f32.xlu1 %v1485_v51  ;;  %1459 = vadd.xlane.f32.xlu0 %v1458_v10  ;;  %3605 = vpow2.f32 %v1417_v53  ;;  %v1377_v17 = vsub.f32 %v4370_v31, %v1331_v15 }
 0x53e   : > { %v1427_v49 = vmul.f32 1.442695, %v1384_v57 }
 0x53f   : > { %v4480_v60 = vpop.eup %3597  ;;  %v1413_v58 = vmul.f32 1.442695, %v1377_v17  ;;  %v3484_v51 = vpop.permute.xlu0 %3483 }
 0x540   : > { %3607 = vpow2.f32 %v1427_v49  ;;  %v1355_v6 = vpop.xlane.xlu1 %1354  ;;  %v1506_v27 = vsel %vm1292_vm7, %v4480_v60, 0.0 }
 0x541   : > { %3609 = vpow2.f32 %v1413_v58  ;;  %v1385_v21 = vsub.f32 %v4378_v34, %v1355_v6  ;;  %1507 = vadd.xlane.f32.xlu1 %v1506_v27 }
 0x542   : > { %v4484_v30 = vpop.eup %3599 }
 0x543   : > { %v1503_v7 = vsel %vm1292_vm7, %v4484_v30, 0.0  ;;  %v4489_v36 = vpop.eup %3601  ;;  %v1429_v31 = vmul.f32 1.442695, %v1385_v21 }
 0x544   : > { %1504 = vadd.xlane.f32.xlu0 %v1503_v7  ;;  %v1349_v12 = vpop.xlane.xlu1 %1348  ;;  %v1500_v39 = vsel %vm1292_vm7, %v4489_v36, 0.0 }
 0x545   : > { %3611 = vpow2.f32 %v1429_v31  ;;  %v1383_v13 = vsub.f32 %v4384_v45, %v1349_v12  ;;  %1501 = vadd.xlane.f32.xlu1 %v1500_v39 }
 0x546   : > { %v4493_v44 = vpop.eup %3603 }
 0x547   : > { %v1476_v34 = vsel %vm1292_vm7, %v4493_v44, 0.0  ;;  %v4498_v48 = vpop.eup %3605  ;;  %v1425_v18 = vmul.f32 1.442695, %v1383_v13 }
 0x548   : > { %1477 = vadd.xlane.f32.xlu0 %v1476_v34  ;;  %v1479_v63 = vsel %vm1292_vm7, %v4498_v48, 0.0  ;;  %v4524_v10 = vpop.permute.xlu1 %715 }
 0x549   : > { %3613 = vpow2.f32 %v1425_v18  ;;  %1480 = vadd.xlane.f32.xlu1 %v1479_v63 }
 0x54a   : > { %v4502_v52 = vpop.eup %3607 }
 0x54b   : > { %v1494_v26 = vsel %vm1292_vm7, %v4502_v52, 0.0  ;;  %v4506_v5 = vpop.eup %3609 }
 0x54c   : > { %1495 = vadd.xlane.f32.xlu0 %v1494_v26  ;;  %v1473_v45 = vsel %vm1292_vm7, %v4506_v5, 0.0 }
 0x54d   : > { %1474 = vadd.xlane.f32.xlu1 %v1473_v45  ;;  %v1576_v45 = vpack.c.bf16 %v4161_v4, %v4161_v4 }
 0x54f   : > { %v4510_v29 = vpop.eup %3611 }
 0x550   : > { %v1497_v37 = vsel %vm1292_vm7, %v4510_v29, 0.0 }
 0x551   : > { %1498 = vadd.xlane.f32.xlu1 %v1497_v37 }
 0x553   : > { %v4514_v46 = vpop.eup %3613 }
 0x554   : > { %v1491_v62 = vsel %vm1292_vm7, %v4514_v46, 0.0 }
 0x555   : > { %1492 = vadd.xlane.f32.xlu1 %v1491_v62 }
 0x562   : > { %703 = vrot.lane.b32.xlu0 %v4161_v4, %s3776_s24 }
 0x566   : > { %721 = vrot.lane.b32.xlu0 %v4161_v4, %s3777_s2  ;;  %3488 = vrot.lane.b32.xlu1 %v4159_v2, %s3777_s2  ;;  %v1654_v4 = vsel %vm1595_vm6, %v1576_v45, 0  ;;  %s2348_s2 = scalar_lea.vmem %s4842_s12, %s4013_s26 }
 0x570   : > { %v1445_v53 = vpop.xlane.xlu0 %1444 }
 0x571   : > { %3615 = vrcp.f32 %v1445_v53  ;;  %v3486_v53 = vunpack.i.h.bf16 %v3484_v51 }
 0x574   : > { %v1439_v57 = vpop.xlane.xlu0 %1438 }
 0x575   : > { %3617 = vrcp.f32 %v1439_v57 }
 0x578   : > { %v1454_v15 = vpop.xlane.xlu0 %1453 }
 0x579   : > { %v1442_v49 = vpop.xlane.xlu1 %1441 }
 0x57a   : > { %3619 = vrcp.f32 %v1442_v49 }
 0x57b   : > { %v3616_v6 = vpop.eup %3615 }
 0x57c   : > { %v1448_v17 = vpop.xlane.xlu0 %1447  ;;  %v1535_v2 = vmul.f32 %v3616_v6, %v4404_v23  ;;  %v3476_v23 = vunpack.i.h.bf16 %v4226_v59 }
 0x57d   : > { %3621 = vrcp.f32 %v1448_v17  ;;  %v1451_v58 = vpop.xlane.xlu1 %1450 }
 0x57e   : > { %3623 = vrcp.f32 %v1451_v58  ;;  %v1558_v18 = vpack.c.bf16 %v1535_v2, %v1535_v2 }
 0x57f   : > { %3625 = vrcp.f32 %v1454_v15  ;;  %v3618_v27 = vpop.eup %3617 }
 0x580   : > { %v1533_v7 = vmul.f32 %v3618_v27, %v4408_v32 }
 0x584   : > { %v3620_v21 = vpop.eup %3619 }
 0x585   : > { %v1534_v31 = vmul.f32 %v3620_v21, %v4414_v43  ;;  %v3480_v43 = vunpack.i.l.bf16 %v4397_v54 }
 0x587   : > { %v3622_v12 = vpop.eup %3621  ;;  %v1557_v39 = vpack.c.bf16 %v1534_v31, %v1533_v7  ;;  %v1579_v37 = vpack.c.bf16 %v3480_v43, %v3476_v23 }
 0x588   : > { %v1536_v13 = vmul.f32 %v3622_v12, %v4418_v33  ;;  %v3624_v34 = vpop.eup %3623 }
 0x589   : > { %v3626_v63 = vpop.eup %3625  ;;  %3142 = vmatprep.mubr.msk.bf16.mxu0 %vm1292_vm7, %v1557_v39  ;;  %v1537_v26 = vmul.f32 %v3624_v34, %v4422_v38  ;;  %v3481_v38 = vunpack.i.h.bf16 %v4397_v54 }
 0x58a   : > { %3143 = vmatmul.mubr.msk.bf16.vlgmr.msra.gmra.mrb[40].mxu0 %vm1292_vm7, %v1558_v18  ;;  %v1538_v33 = vmul.f32 %v3626_v63, %v4412_v42 }
 0x58b   : > { %3147 = vmatpush3.bf16.msra.mxu0 %v4157_v0  ;;  %v1559_v32 = vpack.c.bf16 %v1537_v26, %v1536_v13  ;;  %v1580_v62 = vpack.c.bf16 %v3481_v38, %v3481_v38  ;;  %v3485_v0 = vunpack.i.l.bf16 %v3484_v51 }
 0x58c   : > { %3297 = vmatprep.subr.msk.bf16.mxu0 %vm1595_vm6, %v1576_v45  ;;  %v1560_v59 = vpack.c.bf16 %v1538_v33, %v1538_v33 }
 0x58d   : > { %3150 = vmatprep.mubr.msk.bf16.mxu0 %vm1292_vm7, %v1559_v32  ;;  %v1583_v42 = vpack.c.bf16 %v3486_v53, %v3485_v0  ;;  %v1768_v57 = vsel %vm1595_vm6, %v1580_v62, 0 }
 0x58f   : > { %3149 = vmatpush3.bf16.msra.mxu0 %v1654_v4 }
 0x590   : > { %3162 = vmatprep.subr.bf16.mxu0 %v1579_v37 }
 0x592   : > { %3151 = vmatmul.mubr.msk.bf16.vlgmr.msra.gmra.mrb[44].mxu0 %vm1292_vm7, %v1560_v59 }
 0x593   : > { %3163 = vmatpush3.bf16.msra.mxu0 %v1579_v37 }
 0x594   : > { %3299 = vmatprep.subr.msk.bf16.mxu0 %vm1595_vm6, %v1580_v62 }
 0x597   : > { %3165 = vmatpush3.bf16.msra.mxu0 %v1768_v57 }
 0x598   : > { %3178 = vmatprep.subr.bf16.mxu0 %v1583_v42 }
 0x5a3   : > { %v1472_v54 = vpop.xlane.xlu0 %1471 }
 0x5a4   : > { %3627 = vrcp.f32 %v1472_v54 }
 0x5a6   : > { %v1469_v15 = vpop.xlane.xlu1 %1468 }
 0x5a7   : > { %3629 = vrcp.f32 %v1469_v15  ;;  %v1466_v49 = vpop.xlane.xlu0 %1465 }
 0x5a8   : > { %3631 = vrcp.f32 %v1466_v49 }
 0x5ae   : > { %v3628_v17 = vpop.eup %3627 }
 0x5af   : > { %v1544_v51 = vmul.f32 %v3628_v17, %v4431_v56 }
 0x5b1   : > { %v3630_v58 = vpop.eup %3629  ;;  %v1564_v7 = vpack.c.bf16 %v1544_v51, %v1544_v51 }
 0x5b2   : > { %v3632_v6 = vpop.eup %3631  ;;  %v1543_v27 = vmul.f32 %v3630_v58, %v4436_v19  ;;  %v1463_v12 = vpop.xlane.xlu1 %1462 }
 0x5b3   : > { %v1542_v21 = vmul.f32 %v3632_v6, %v4438_v41  ;;  %3633 = vrcp.f32 %v1463_v12 }
 0x5b5   : > { %v1563_v2 = vpack.c.bf16 %v1543_v27, %v1542_v21 }
 0x5b7   : > { %3166 = vmatprep.mubr.msk.bf16.mxu0 %vm1292_vm7, %v1563_v2 }
 0x5b8   : > { %3167 = vmatmul.mubr.msk.bf16.vlgmr.msra.gmra.mrb[48].mxu0 %vm1292_vm7, %v1564_v7 }
 0x5b9   : > { %3179 = vmatpush3.bf16.msra.mxu0 %v1583_v42 }
 0x5bd   : > { %v3634_v18 = vpop.eup %3633 }
 0x5be   : > { %v1490_v31 = vpop.xlane.xlu0 %1489  ;;  %v1541_v33 = vmul.f32 %v3634_v18, %v4445_v24 }
 0x5c0   : > { %v1562_v57 = vpack.c.bf16 %v1541_v33, %v1541_v33 }
 0x5c2   : > { %v1484_v39 = vpop.xlane.xlu0 %1483 }
 0x5c3   : > { %3635 = vrcp.f32 %v1484_v39 }
 0x5c6   : > { %v1457_v13 = vpop.xlane.xlu1 %1456 }
 0x5c7   : > { %3637 = vrcp.f32 %v1457_v13 }
 0x5ca   : > { %v1487_v34 = vpop.xlane.xlu1 %1486  ;;  %v1460_v56 = vpop.xlane.xlu0 %1459 }
 0x5cb   : > { %3639 = vrcp.f32 %v1487_v34 }
 0x5cc   : > { %3641 = vrcp.f32 %v1460_v56 }
 0x5cd   : > { %3643 = vrcp.f32 %v1490_v31  ;;  %v3636_v63 = vpop.eup %3635 }
 0x5ce   : > { %v1508_v19 = vpop.xlane.xlu1 %1507  ;;  %v1548_v38 = vmul.f32 %v3636_v63, %v4458_v11  ;;  %v3471_v11 = vunpack.i.h.bf16 %v4388_v47 }
 0x5d1   : > { %v1505_v41 = vpop.xlane.xlu0 %1504  ;;  %v3638_v45 = vpop.eup %3637 }
 0x5d2   : > { %3645 = vrcp.f32 %v1505_v41  ;;  %v1502_v26 = vpop.xlane.xlu1 %1501  ;;  %v1539_v59 = vmul.f32 %v3638_v45, %v4464_v55  ;;  %v1582_v55 = vpack.c.bf16 %v4394_v40, %v4394_v40 }
 0x5d3   : > { %3647 = vrcp.f32 %v1502_v26 }
 0x5d4   : > { %v1825_v40 = vsel %vm1595_vm6, %v1582_v55, 0 }
 0x5d5   : > { %v3640_v23 = vpop.eup %3639  ;;  %v1478_v32 = vpop.xlane.xlu0 %1477 }
 0x5d6   : > { %v3642_v43 = vpop.eup %3641  ;;  %v1549_v37 = vmul.f32 %v3640_v23, %v4466_v35  ;;  %v1481_v4 = vpop.xlane.xlu1 %1480  ;;  %v3470_v35 = vunpack.i.l.bf16 %v4388_v47 }
 0x5d7   : > { %v1540_v62 = vmul.f32 %v3642_v43, %v4472_v50  ;;  %3649 = vrcp.f32 %v1481_v4  ;;  %v3644_v54 = vpop.eup %3643 }
 0x5d8   : > { %v1567_v53 = vpack.c.bf16 %v1549_v37, %v1548_v38  ;;  %3651 = vrcp.f32 %v1478_v32  ;;  %v1550_v17 = vmul.f32 %v3644_v54, %v4453_v61  ;;  %v1585_v27 = vpack.c.bf16 %v3471_v11, %v3470_v35 }
 0x5d9   : > { %v1496_v0 = vpop.xlane.xlu0 %1495  ;;  %v1561_v42 = vpack.c.bf16 %v1540_v62, %v1539_v59  ;;  %v1586_v32 = vpack.c.bf16 %v4524_v10, %v4524_v10 }
 0x5da   : > { %3182 = vmatprep.mubr.msk.bf16.mxu0 %vm1292_vm7, %v1567_v53  ;;  %v1475_v15 = vpop.xlane.xlu1 %1474 }
 0x5db   : > { %3158 = vmatprep.mubr.msk.bf16.mxu1 %vm1292_vm7, %v1561_v42  ;;  %3653 = vrcp.f32 %v1475_v15  ;;  %v1939_v10 = vsel %vm1595_vm6, %v1586_v32, 0 }
 0x5dc   : > { %v3646_v24 = vpop.eup %3645  ;;  %3159 = vmatmul.mubr.msk.bf16.vlgmr.msra.gmra.mrb[28].mxu1 %vm1292_vm7, %v1562_v57  ;;  %3655 = vrcp.f32 %v1508_v19 }
 0x5dd   : > { %3171 = vmatpush3.bf16.msra.mxu1 %v4235_v9  ;;  %v704_v50 = vpop.permute.xlu0 %703  ;;  %v3648_v49 = vpop.eup %3647  ;;  %v1555_v47 = vmul.f32 %v3646_v24, %v4484_v30  ;;  %v1568_v9 = vpack.c.bf16 %v1550_v17, %v1550_v17 }
 0x5de   : > { %3300 = vmatprep.subr.msk.bf16.mxu1 %vm1595_vm6, %v1582_v55  ;;  %v1584_v58 = vpack.c.bf16 %v704_v50, %v704_v50  ;;  %v1499_v6 = vpop.xlane.xlu1 %1498  ;;  %v1554_v51 = vmul.f32 %v3648_v49, %v4489_v36 }
 0x5df   : > { %3657 = vrcp.f32 %v1499_v6 }
 0x5e0   : > { %v1882_v21 = vsel %vm1595_vm6, %v1584_v58, 0  ;;  %3301 = vmatprep.subr.msk.bf16.mxu0 %vm1595_vm6, %v1584_v58  ;;  %3659 = vrcp.f32 %v1496_v0  ;;  %v1571_v7 = vpack.c.bf16 %v1555_v47, %v1554_v51 }
 0x5e1   : > { %3173 = vmatpush3.bf16.msra.mxu1 %v1825_v40  ;;  %3181 = vmatpush3.bf16.msra.mxu0 %v1882_v21  ;;  %v3650_v61 = vpop.eup %3649  ;;  %v722_v19 = vpop.permute.xlu0 %721 }
 0x5e2   : > { %3186 = vmatprep.subr.bf16.mxu1 %v1585_v27  ;;  %v1493_v2 = vpop.xlane.xlu1 %1492  ;;  %v3652_v36 = vpop.eup %3651  ;;  %v1547_v31 = vmul.f32 %v3650_v61, %v4498_v48  ;;  %v1588_v48 = vpack.c.bf16 %v722_v19, %v722_v19 }
 0x5e3   : > { %3661 = vrcp.f32 %v1493_v2  ;;  %v1546_v13 = vmul.f32 %v3652_v36, %v4493_v44 }
 0x5e4   : > { %3183 = vmatmul.mubr.msk.bf16.vlgmr.msra.gmra.mrb[52].mxu0 %vm1292_vm7, %v1568_v9  ;;  %v1566_v26 = vpack.c.bf16 %v1547_v31, %v1547_v31  ;;  %v1996_v37 = vsel %vm1595_vm6, %v1588_v48, 0  ;;  %v3543_v9 = vld [vmem:[%s2141_s4] sm:$0xff]  }
 0x5e5   : > { %3198 = vmatprep.mubr.msk.bf16.mxu0 %vm1292_vm7, %v1571_v7  ;;  %v3654_v30 = vpop.eup %3653 }
 0x5e6   : > { %v3489_v12 = vpop.permute.xlu1 %3488  ;;  %v1545_v39 = vmul.f32 %v3654_v30, %v4506_v5  ;;  %v3656_v18 = vpop.eup %3655  ;;  %v3544_v30 = vld [vmem:[%s2141_s4 + $0x8] sm:$0xff]  }
 0x5e7   : > { %v3491_v34 = vunpack.i.h.bf16 %v3489_v12  ;;  %v3490_v56 = vunpack.i.l.bf16 %v3489_v12  ;;  %v1556_v5 = vmul.f32 %v3656_v18, %v4480_v60 }
 0x5e8   : > { %v1565_v41 = vpack.c.bf16 %v1546_v13, %v1545_v39 }
 0x5e9   : > { %v1587_v63 = vpack.c.bf16 %v3491_v34, %v3490_v56  ;;  %v3658_v45 = vpop.eup %3657  ;;  %v1572_v62 = vpack.c.bf16 %v1556_v5, %v1556_v5 }
 0x5ea   : > { %3174 = vmatprep.mubr.msk.bf16.mxu1 %vm1292_vm7, %v1565_v41  ;;  %v3660_v23 = vpop.eup %3659  ;;  %v1553_v43 = vmul.f32 %v3658_v45, %v4510_v29 }
 0x5eb   : > { %3175 = vmatmul.mubr.msk.bf16.vlgmr.msra.gmra.mrb[32].mxu1 %vm1292_vm7, %v1566_v26  ;;  %3194 = vmatprep.subr.bf16.mxu0 %v1587_v63  ;;  %v1552_v38 = vmul.f32 %v3660_v23, %v4502_v52 }
 0x5ec   : > { %3187 = vmatpush3.bf16.msra.mxu1 %v1585_v27  ;;  %3195 = vmatpush3.bf16.msra.mxu0 %v1587_v63  ;;  %v1570_v59 = vpack.c.bf16 %v1553_v43, %v1553_v43 }
 0x5ed   : > { %v3662_v44 = vpop.eup %3661  ;;  %3302 = vmatprep.subr.msk.bf16.mxu1 %vm1595_vm6, %v1586_v32  ;;  %3303 = vmatprep.subr.msk.bf16.mxu0 %vm1595_vm6, %v1588_v48 }
 0x5ee   : > { %v1551_v33 = vmul.f32 %v3662_v44, %v4514_v46 }
 0x5f0   : > { %3189 = vmatpush3.bf16.msra.mxu1 %v1939_v10  ;;  %3197 = vmatpush3.bf16.msra.mxu0 %v1996_v37  ;;  %v1569_v4 = vpack.c.bf16 %v1552_v38, %v1551_v33 }
 0x5f1   : > { %3202 = vmatprep.subr.bf16.mxu1 %v3773_v3  ;;  %3218 = vmatprep.subr.bf16.mxu0 %v3773_v3 }
 0x5f2   : > { %3190 = vmatprep.mubr.msk.bf16.mxu1 %vm1292_vm7, %v1569_v4 }
 0x5f3   : > { %3191 = vmatmul.mubr.msk.bf16.vlgmr.msra.gmra.mrb[36].mxu1 %vm1292_vm7, %v1570_v59  ;;  %3199 = vmatmul.mubr.msk.bf16.vlgmr.msra.gmra.mrb[56].mxu0 %vm1292_vm7, %v1572_v62 }
 0x5f4   : > { %3206 = vmatprep.mubr.msk.bf16.mxu1 %vm3774_vm4, %v3773_v3  ;;  %3222 = vmatprep.mubr.msk.bf16.mxu0 %vm3774_vm4, %v3773_v3 }
 0x5f5   : > { %3203 = vmatpush3.bf16.msra.mxu1 %v3543_v9 }
 0x5f6   : > { %3204 = vmatprep.subr.bf16.mxu1 %v3773_v3 }
 0x5f9   : > { %3205 = vmatpush3.bf16.msra.mxu1 %v3544_v30 }
 0x5fa   : > { %3234 = vmatprep.subr.bf16.mxu1 %v3773_v3 }
 0x65d   : > { %v4597_v60 = vpop.f32.mrb[40].mxu0 }
 0x65e   : > { %v4599_v52 = vpop.f32.mrb[41].mxu0 }
 0x65f   : > { %v3145_v29 = vpop.f32.mrb[42].mxu0 }
 0x660   : > { %v4601_v46 = vpop.f32.mrb[43].mxu0 }
 0x665   : > { %v4603_v53 = vpop.f32.mrb[44].mxu0 }
 0x666   : > { %v4605_v0 = vpop.f32.mrb[45].mxu0 }
 0x667   : > { %v3153_v42 = vpop.f32.mrb[46].mxu0 }
 0x668   : > { %v4607_v57 = vpop.f32.mrb[47].mxu0 }
 0x68b   : > { %v3168_v54 = vpop.f32.mrb[48].mxu0 }
 0x68c   : > { %v1804_v15 = vpop.f32.mrb[49].mxu0 }
 0x68d   : > { %v3169_v24 = vpop.f32.mrb[50].mxu0 }
 0x68e   : > { %v1807_v11 = vpop.f32.mrb[51].mxu0 }
 0x68f   : > { %v3522_v35 = vpack.i.bf16 %v3168_v54, %v1807_v11 }
 0x6af   : > { %v3160_v55 = vpop.f32.mrb[28].mxu1 }
 0x6b0   : > { %v3507_v50 = vpack.i.bf16 %v1804_v15, %v3160_v55  ;;  %v1747_v49 = vpop.f32.mrb[29].mxu1 }
 0x6b1   : > { %v3161_v17 = vpop.f32.mrb[30].mxu1 }
 0x6b2   : > { %v1750_v58 = vpop.f32.mrb[31].mxu1 }
 0x6b3   : > { %v3492_v6 = vpack.i.bf16 %v1750_v58, %v1747_v49 }
 0x6b5   : > { %3493 = vrot.lane.b32.xlu1 %v3492_v6, %s3778_s25 }
 0x6b7   : > { %v3184_v51 = vpop.f32.mrb[52].mxu0 }
 0x6b8   : > { %v1918_v47 = vpop.f32.mrb[53].mxu0 }
 0x6b9   : > { %v3185_v27 = vpop.f32.mrb[54].mxu0 }
 0x6ba   : > { %v1921_v40 = vpop.f32.mrb[55].mxu0 }
 0x6bb   : > { %v3527_v21 = vpack.i.bf16 %v3184_v51, %v1921_v40 }
 0x6be   : > { %v3176_v61 = vpop.f32.mrb[32].mxu1 }
 0x6bf   : > { %v3512_v2 = vpack.i.bf16 %v1918_v47, %v3176_v61  ;;  %v1861_v7 = vpop.f32.mrb[33].mxu1 }
 0x6c0   : > { %v3177_v36 = vpop.f32.mrb[34].mxu1 }
 0x6c1   : > { %v1864_v31 = vpop.f32.mrb[35].mxu1 }
 0x6c2   : > { %v3497_v12 = vpack.i.bf16 %v1864_v31, %v1861_v7 }
 0x6c4   : > { %3498 = vrot.lane.b32.xlu0 %v3497_v12, %s3779_s29 }
 0x6c6   : > { %v3192_v39 = vpop.f32.mrb[36].mxu1  ;;  %v3200_v13 = vpop.f32.mrb[56].mxu0 }
 0x6c7   : > { %v1975_v34 = vpop.f32.mrb[37].mxu1  ;;  %v2032_v56 = vpop.f32.mrb[57].mxu0 }
 0x6c8   : > { %v3517_v19 = vpack.i.bf16 %v2032_v56, %v3192_v39  ;;  %3508 = vrot.lane.b32.xlu0 %v3507_v50, %s3778_s25  ;;  %v3193_v41 = vpop.f32.mrb[38].mxu1  ;;  %v3201_v18 = vpop.f32.mrb[58].mxu0 }
 0x6c9   : > { %v1978_v63 = vpop.f32.mrb[39].mxu1  ;;  %v2035_v26 = vpop.f32.mrb[59].mxu0 }
 0x6ca   : > { %v3502_v45 = vpack.i.bf16 %v1978_v63, %v1975_v34  ;;  %v3532_v23 = vpack.i.bf16 %v3200_v13, %v2035_v26 }
 0x6cc   : > { %3503 = vrot.lane.b32.xlu1 %v3502_v45, %s3780_s30  ;;  %3518 = vrot.lane.b32.xlu0 %v3517_v19, %s3780_s30 }
 0x6d0   : > { %3513 = vrot.lane.b32.xlu1 %v3512_v2, %s3779_s29  ;;  %3528 = vrot.lane.b32.xlu0 %v3527_v21, %s3779_s29  ;;  %s2240_s29 = scalar_lea.vmem %s4841_s11, %s3769_s3  ;;  %s196_s3 = sadd.s32 1, %s3769_s3  }
 0x6d1   : > { %p193_p0 = scmp.ge.s32.totalorder %s196_s3, 4  }
 0x6d2   :  { %vm2615_vm9 = vcmask (%p193_p0), 1041409   ;;  %vm2618_vm10 = vcmask (%p193_p0), 254976   ;;  %s3781_s15 = smov (%p193_p0), [#allocation2]  }
 0x6d4   : > { %3523 = vrot.lane.b32.xlu1 %v3522_v35, %s3778_s25 }
 0x6d8   : > { %3533 = vrot.lane.b32.xlu1 %v3532_v23, %s3780_s30 }
 0x727   : > { %v3494_v48 = vpop.permute.xlu1 %3493 }
 0x728   : > { %v3496_v44 = vunpack.i.h.bf16 %v3494_v48  ;;  %v3495_v5 = vunpack.i.l.bf16 %v3494_v48 }
 0x72a   : > { %v2119_v37 = vsel %vm761_vm5, %v4601_v46, %v3496_v44  ;;  %v2118_v4 = vsel %vm761_vm5, %v4599_v52, %v3495_v5 }
 0x736   : > { %v3499_v32 = vpop.permute.xlu0 %3498 }
 0x737   : > { %v3501_v33 = vunpack.i.h.bf16 %v3499_v32  ;;  %v3500_v38 = vunpack.i.l.bf16 %v3499_v32 }
 0x739   : > { %v2126_v29 = vsel %vm2124_vm8, %v2119_v37, %v3501_v33  ;;  %v2125_v42 = vsel %vm2124_vm8, %v2118_v4, %v3500_v38 }
 0x73a   : > { %v3509_v43 = vpop.permute.xlu0 %3508 }
 0x73b   : > { %v3511_v54 = vunpack.i.h.bf16 %v3509_v43  ;;  %v3510_v15 = vunpack.i.l.bf16 %v3509_v43 }
 0x73d   : > { %v2121_v52 = vsel %vm761_vm5, %v4605_v0, %v3511_v54  ;;  %v2120_v17 = vsel %vm761_vm5, %v4597_v60, %v3510_v15 }
 0x73e   : > { %v3504_v10 = vpop.permute.xlu1 %3503  ;;  %v3519_v35 = vpop.permute.xlu0 %3518 }
 0x73f   : > { %v3506_v59 = vunpack.i.h.bf16 %v3504_v10  ;;  %v3505_v62 = vunpack.i.l.bf16 %v3504_v10  ;;  %v3521_v58 = vunpack.i.h.bf16 %v3519_v35  ;;  %v3520_v6 = vunpack.i.l.bf16 %v3519_v35 }
 0x741   : > { %v2131_v24 = vsel %vm1292_vm7, %v2125_v42, %v3505_v62  ;;  %v2132_v11 = vsel %vm1292_vm7, %v2126_v29, %v3506_v59 }
 0x742   : > { %v2137_v55 = vpack.c.bf16 %v2132_v11, %v2131_v24  ;;  %v3514_v50 = vpop.permute.xlu1 %3513  ;;  %v3529_v0 = vpop.permute.xlu0 %3528 }
 0x743   : > { %v3516_v49 = vunpack.i.h.bf16 %v3514_v50  ;;  %v3515_v46 = vunpack.i.l.bf16 %v3514_v50  ;;  %v3531_v36 = vunpack.i.h.bf16 %v3529_v0  ;;  %v3530_v30 = vunpack.i.l.bf16 %v3529_v0 }
 0x744   : > { %3207 = vmatmul.mubr.msk.bf16.vlgmr.msra.gmra.mrb[40].mxu1 %vm207_vm3, %v2137_v55 }
 0x745   : > { %v2128_v51 = vsel %vm2124_vm8, %v2121_v52, %v3516_v49  ;;  %v2127_v47 = vsel %vm2124_vm8, %v2120_v17, %v3515_v46  ;;  %3210 = vmatprep.mubr.msk.bf16.mxu1 %vm3774_vm4, %v3773_v3 }
 0x746   : > { %v3524_v27 = vpop.permute.xlu1 %3523  ;;  %v2133_v40 = vsel %vm1292_vm7, %v2127_v47, %v3520_v6  ;;  %v2134_v21 = vsel %vm1292_vm7, %v2128_v51, %v3521_v58 }
 0x747   : > { %v3526_v9 = vunpack.i.h.bf16 %v3524_v27  ;;  %v3525_v61 = vunpack.i.l.bf16 %v3524_v27  ;;  %v2138_v60 = vpack.c.bf16 %v2134_v21, %v2133_v40 }
 0x749   : > { %v2123_v2 = vsel %vm761_vm5, %v4603_v53, %v3526_v9  ;;  %v2122_v7 = vsel %vm761_vm5, %v4607_v57, %v3525_v61  ;;  %v2861_v57 = vld [vmem:[%s2146_s1] ss:$0 sm:$0xff] }
 0x74a   : > { %v3534_v31 = vpop.permute.xlu1 %3533  ;;  %v2129_v13 = vsel %vm2124_vm8, %v2122_v7, %v3530_v30  ;;  %v2130_v34 = vsel %vm2124_vm8, %v2123_v2, %v3531_v36 }
 0x74b   : > { %v3536_v12 = vunpack.i.h.bf16 %v3534_v31  ;;  %v3535_v39 = vunpack.i.l.bf16 %v3534_v31 }
 0x74c   : > { %3211 = vmatmul.mubr.msk.bf16.gmra.mrb[44].mxu1 %vm207_vm3, %v2138_v60 }
 0x74d   : > { %v2136_v56 = vsel %vm1292_vm7, %v2130_v34, %v3536_v12  ;;  %v2135_v19 = vsel %vm1292_vm7, %v2129_v13, %v3535_v39  ;;  %3214 = vmatprep.mubr.msk.bf16.mxu1 %vm3774_vm4, %v3773_v3 }
 0x74e   : > { %v2139_v53 = vpack.c.bf16 %v2136_v56, %v2135_v19 }
 0x754   : > { %3215 = vmatmul.mubr.msk.bf16.gmra.mrb[48].mxu1 %vm207_vm3, %v2139_v53 }
 0x755   : > { %3250 = vmatprep.mubr.msk.bf16.mxu1 %vm3774_vm4, %v3773_v3 }
 0x817   : > { %v2209_v41 = vpop.f32.mrb[40].mxu1 }
 0x818   : > { %v2210_v18 = vadd.f32 %v2861_v57, %v2209_v41  ;;  %v3208_v63 = vpop.f32.mrb[41].mxu1  ;;  %v3546_v41 = vld [vmem:[%s2348_s2 + $0x8] sm:$0xff]  }
 0x819   : > { %v2212_v26 = vpop.f32.mrb[42].mxu1  ;;  %v3548_v63 = vld [vmem:[%s4033_s23 + $0x8] sm:$0xff]  }
 0x81a   : > { %v4656_v45 = vadd.f32 %v3765_v16, %v2210_v18  ;;  %v2213_v23 = vadd.f32 %v2861_v57, %v2212_v26  ;;  %v3209_v32 = vpop.f32.mrb[43].mxu1  ;;  %v3547_v18 = vld [vmem:[%s4033_s23] sm:$0xff]  }
 0x81b   : > { %3235 = vmatpush3.bf16.msra.mxu1 %v3547_v18  ;;  %v2870_v18 = vld [vmem:[%s2353_s21] ss:$0 sm:$0xff] }
 0x81c   : > { %v4659_v48 = vadd.f32 %v3761_v22, %v2213_v23  ;;  %v2242_v44 = vsel %vm207_vm3, %v4656_v45, 0.0  ;;  %3236 = vmatprep.subr.bf16.mxu1 %v3773_v3 }
 0x81d   : > { %2243 = vadd.xlane.f32.xlu0 %v2242_v44 }
 0x81e   : > { %v2245_v5 = vsel %vm207_vm3, %v4659_v48, 0.0 }
 0x81f   : > { %v2217_v43 = vpop.f32.mrb[44].mxu1  ;;  %2246 = vadd.xlane.f32.xlu1 %v2245_v5  ;;  %3237 = vmatpush3.bf16.msra.mxu1 %v3548_v63 }
 0x820   : > { %v2218_v33 = vadd.f32 %v2861_v57, %v2217_v43  ;;  %v3212_v38 = vpop.f32.mrb[45].mxu1  ;;  %3238 = vmatprep.subr.bf16.mxu1 %v3773_v3 }
 0x821   : > { %v2220_v10 = vpop.f32.mrb[46].mxu1 }
 0x822   : > { %v4666_v16 = vadd.f32 %v3757_v14, %v2218_v33  ;;  %v2221_v37 = vadd.f32 %v2861_v57, %v2220_v10  ;;  %v3213_v4 = vpop.f32.mrb[47].mxu1 }
 0x824   : > { %v4669_v22 = vadd.f32 %v3753_v20, %v2221_v37  ;;  %v2248_v59 = vsel %vm207_vm3, %v4666_v16, 0.0 }
 0x825   : > { %2249 = vadd.xlane.f32.xlu0 %v2248_v59 }
 0x826   : > { %v2251_v54 = vsel %vm207_vm3, %v4669_v22, 0.0 }
 0x827   : > { %v2225_v62 = vpop.f32.mrb[48].mxu1 }
 0x828   : > { %v2226_v29 = vadd.f32 %v2861_v57, %v2225_v62  ;;  %v3216_v42 = vpop.f32.mrb[49].mxu1  ;;  %v2867_v62 = vld [vmem:[%s2238_s27] ss:$0 sm:$0xff] }
 0x829   : > { %2252 = vadd.xlane.f32.xlu0 %v2251_v54  ;;  %v2228_v15 = vpop.f32.mrb[50].mxu1 }
 0x82a   : > { %v4676_v14 = vadd.f32 %v3749_v25, %v2226_v29  ;;  %v2229_v24 = vadd.f32 %v2861_v57, %v2228_v15  ;;  %v3217_v11 = vpop.f32.mrb[51].mxu1  ;;  %v3545_v57 = vld [vmem:[%s2348_s2] sm:$0xff]  }
 0x82b   : > { %3219 = vmatpush3.bf16.msra.mxu0 %v3545_v57  ;;  %v3553_v57 = vld [vmem:[%s4033_s23 + $0x30] sm:$0xff]  }
 0x82c   : > { %v4679_v20 = vadd.f32 %v3745_v28, %v2229_v24  ;;  %v2254_v35 = vsel %vm207_vm3, %v4676_v14, 0.0  ;;  %3220 = vmatprep.subr.bf16.mxu0 %v3773_v3 }
 0x82d   : > { %2255 = vadd.xlane.f32.xlu0 %v2254_v35 }
 0x82e   : > { %v2257_v55 = vsel %vm207_vm3, %v4679_v20, 0.0 }
 0x82f   : > { %2258 = vadd.xlane.f32.xlu1 %v2257_v55  ;;  %3221 = vmatpush3.bf16.msra.mxu0 %v3546_v41  ;;  %v3554_v41 = vld [vmem:[%s4033_s23 + $0x38] sm:$0xff]  }
 0x830   :  { %3262 = vmatprep.subr.bf16.mxu0 (%p193_p0), %v3771_v1 }
 0x8aa   : > { %v2244_v50 = vpop.xlane.xlu0 %2243 }
 0x8ab   : > { %v2260_v49 = vmul.f32 0.03125, %v2244_v50 }
 0x8ac   : > { %v2247_v46 = vpop.xlane.xlu1 %2246 }
 0x8ad   : > { %v4686_v52 = vsub.f32 %v4656_v45, %v2260_v49  ;;  %v2261_v25 = vmul.f32 0.03125, %v2247_v46  ;;  %v2868_v46 = vld [vmem:[%s2240_s29] ss:$0 sm:$0xff] }
 0x8af   : > { %v4689_v17 = vsub.f32 %v4659_v48, %v2261_v25  ;;  %v2272_v28 = vmul.f32 %v4686_v52, %v4686_v52 }
 0x8b1   : > { %v2278_v58 = vsel %vm207_vm3, %v2272_v28, 0.0  ;;  %v2273_v6 = vmul.f32 %v4689_v17, %v4689_v17 }
 0x8b2   : > { %v2250_v51 = vpop.xlane.xlu0 %2249  ;;  %2279 = vadd.xlane.f32.xlu0 %v2278_v58 }
 0x8b3   : > { %v2262_v47 = vmul.f32 0.03125, %v2250_v51  ;;  %v2281_v27 = vsel %vm207_vm3, %v2273_v6, 0.0 }
 0x8b4   : > { %2282 = vadd.xlane.f32.xlu1 %v2281_v27 }
 0x8b5   : > { %v4698_v40 = vsub.f32 %v4666_v16, %v2262_v47 }
 0x8b6   : > { %v2253_v21 = vpop.xlane.xlu0 %2252 }
 0x8b7   : > { %v2263_v0 = vmul.f32 0.03125, %v2253_v21  ;;  %v2274_v9 = vmul.f32 %v4698_v40, %v4698_v40 }
 0x8b9   : > { %v4703_v61 = vsub.f32 %v4669_v22, %v2263_v0  ;;  %v2284_v60 = vsel %vm207_vm3, %v2274_v9, 0.0 }
 0x8ba   : > { %2285 = vadd.xlane.f32.xlu0 %v2284_v60  ;;  %v2256_v2 = vpop.xlane.xlu0 %2255 }
 0x8bb   : > { %v2264_v7 = vmul.f32 0.03125, %v2256_v2  ;;  %v2275_v36 = vmul.f32 %v4703_v61, %v4703_v61 }
 0x8bc   : > { %v2259_v30 = vpop.xlane.xlu1 %2258 }
 0x8bd   : > { %v4709_v31 = vsub.f32 %v4676_v14, %v2264_v7  ;;  %v2265_v12 = vmul.f32 0.03125, %v2259_v30  ;;  %v2287_v39 = vsel %vm207_vm3, %v2275_v36, 0.0 }
 0x8be   : > { %2288 = vadd.xlane.f32.xlu1 %v2287_v39 }
 0x8bf   : > { %v4713_v13 = vsub.f32 %v4679_v20, %v2265_v12  ;;  %v2276_v34 = vmul.f32 %v4709_v31, %v4709_v31 }
 0x8c1   : > { %v2290_v56 = vsel %vm207_vm3, %v2276_v34, 0.0  ;;  %v2277_v19 = vmul.f32 %v4713_v13, %v4713_v13 }
 0x8c2   : > { %2291 = vadd.xlane.f32.xlu0 %v2290_v56  ;;  %v3549_v56 = vld [vmem:[%s4033_s23 + $0x10] sm:$0xff]  }
 0x8c3   : > { %v2293_v53 = vsel %vm207_vm3, %v2277_v19, 0.0  ;;  %3239 = vmatpush3.bf16.msra.mxu1 %v3549_v56  ;;  %v3551_v19 = vld [vmem:[%s4033_s23 + $0x20] sm:$0xff]  }
 0x8c4   : > { %2294 = vadd.xlane.f32.xlu1 %v2293_v53  ;;  %3240 = vmatprep.subr.bf16.mxu1 %v3773_v3  ;;  %v3552_v53 = vld [vmem:[%s4033_s23 + $0x28] sm:$0xff]  }
 0x93f   : > { %v2280_v26 = vpop.xlane.xlu0 %2279 }
 0x940   : > { %v2296_v23 = vmul.f32 0.03125, %v2280_v26 }
 0x941   : > { %v2283_v32 = vpop.xlane.xlu1 %2282 }
 0x942   : > { %v2302_v44 = vadd.f32 1e-05, %v2296_v23  ;;  %v2297_v5 = vmul.f32 0.03125, %v2283_v32 }
 0x944   : > { %3663 = vrsqrt.f32 %v2302_v44  ;;  %v2303_v43 = vadd.f32 1e-05, %v2297_v5 }
 0x946   : > { %3665 = vrsqrt.f32 %v2303_v43 }
 0x947   : > { %v2286_v33 = vpop.xlane.xlu0 %2285 }
 0x948   : > { %v2298_v38 = vmul.f32 0.03125, %v2286_v33 }
 0x94a   : > { %v2304_v10 = vadd.f32 1e-05, %v2298_v38 }
 0x94b   : > { %v2289_v37 = vpop.xlane.xlu1 %2288 }
 0x94c   : > { %3667 = vrsqrt.f32 %v2304_v10  ;;  %v2299_v4 = vmul.f32 0.03125, %v2289_v37 }
 0x94e   : > { %v3664_v59 = vpop.eup %3663  ;;  %v2305_v29 = vadd.f32 1e-05, %v2299_v4 }
 0x94f   : > { %v2314_v42 = vmul.f32 %v3664_v59, %v4686_v52  ;;  %v2292_v54 = vpop.xlane.xlu0 %2291 }
 0x950   : > { %v3666_v15 = vpop.eup %3665  ;;  %3669 = vrsqrt.f32 %v2305_v29  ;;  %v2300_v24 = vmul.f32 0.03125, %v2292_v54 }
 0x951   : > { %v2326_v11 = vmul.f32 %v2867_v62, %v2314_v42  ;;  %v2315_v35 = vmul.f32 %v3666_v15, %v4689_v17  ;;  %v2295_v55 = vpop.xlane.xlu1 %2294 }
 0x952   : > { %v2306_v50 = vadd.f32 1e-05, %v2300_v24  ;;  %v2301_v49 = vmul.f32 0.03125, %v2295_v55 }
 0x953   : > { %v2327_v25 = vmul.f32 %v2867_v62, %v2315_v35  ;;  %v2338_v58 = vadd.f32 %v2868_v46, %v2326_v11 }
 0x954   : > { %3671 = vrsqrt.f32 %v2306_v50  ;;  %v2307_v28 = vadd.f32 1e-05, %v2301_v49 }
 0x955   : > { %v2339_v52 = vadd.f32 %v2868_v46, %v2327_v25 }
 0x956   : > { %v3668_v6 = vpop.eup %3667  ;;  %3673 = vrsqrt.f32 %v2307_v28 }
 0x957   : > { %v2316_v51 = vmul.f32 %v3668_v6, %v4698_v40  ;;  %v2344_v47 = vpack.c.bf16 %v2339_v52, %v2338_v58 }
 0x959   : > { %3223 = vmatmul.mubr.msk.bf16.vlgmr.msra.gmra.mrb[60].mxu0 %vm207_vm3, %v2344_v47  ;;  %v2328_v21 = vmul.f32 %v2867_v62, %v2316_v51 }
 0x95a   : > { %v3670_v27 = vpop.eup %3669  ;;  %3226 = vmatprep.mubr.msk.bf16.mxu0 %vm3774_vm4, %v3773_v3 }
 0x95b   : > { %v2317_v17 = vmul.f32 %v3670_v27, %v4703_v61  ;;  %v2340_v2 = vadd.f32 %v2868_v46, %v2328_v21 }
 0x95d   : > { %v2329_v0 = vmul.f32 %v2867_v62, %v2317_v17 }
 0x95e   : > { %v3672_v9 = vpop.eup %3671 }
 0x95f   : > { %v2318_v60 = vmul.f32 %v3672_v9, %v4709_v31  ;;  %v2341_v7 = vadd.f32 %v2868_v46, %v2329_v0 }
 0x960   : > { %v3674_v36 = vpop.eup %3673 }
 0x961   : > { %v2319_v40 = vmul.f32 %v3674_v36, %v4713_v13  ;;  %v2345_v30 = vpack.c.bf16 %v2341_v7, %v2340_v2  ;;  %v2330_v12 = vmul.f32 %v2867_v62, %v2318_v60  ;;  %v3550_v13 = vld [vmem:[%s4033_s23 + $0x18] sm:$0xff]  }
 0x962   : > { %3241 = vmatpush3.bf16.msra.mxu1 %v3550_v13 }
 0x963   : > { %3227 = vmatmul.mubr.msk.bf16.gmra.mrb[64].mxu0 %vm207_vm3, %v2345_v30  ;;  %v2331_v39 = vmul.f32 %v2867_v62, %v2319_v40  ;;  %v2342_v34 = vadd.f32 %v2868_v46, %v2330_v12  ;;  %3242 = vmatprep.subr.bf16.mxu1 %v3773_v3 }
 0x964   : > { %3230 = vmatprep.mubr.msk.bf16.mxu0 %vm3774_vm4, %v3773_v3 }
 0x965   : > { %v2343_v61 = vadd.f32 %v2868_v46, %v2331_v39 }
 0x966   : > { %3243 = vmatpush3.bf16.msra.mxu1 %v3551_v19 }
 0x967   : > { %v2346_v31 = vpack.c.bf16 %v2343_v61, %v2342_v34  ;;  %3244 = vmatprep.subr.bf16.mxu1 %v3773_v3 }
 0x96a   : > { %3245 = vmatpush3.bf16.msra.mxu1 %v3552_v53  ;;  %v2878_v53 = vld [vmem:[%s2491_s22] ss:$0 sm:$0xff] }
 0x96b   : > { %3231 = vmatmul.mubr.msk.bf16.gmra.mrb[68].mxu0 %vm207_vm3, %v2346_v31  ;;  %3246 = vmatprep.subr.bf16.mxu1 %v3773_v3 }
 0x96c   :  { %3266 = vmatprep.mubr.msk.bf16.mxu0 (%p193_p0), %vm3772_vm0, %v3771_v1 }
 0x96e   : > { %3247 = vmatpush3.bf16.msra.mxu1 %v3553_v57 }
 0x96f   : > { %3248 = vmatprep.subr.bf16.mxu1 %v3773_v3 }
 0x972   : > { %3249 = vmatpush3.bf16.msra.mxu1 %v3554_v41 }
 0xa2c   : > { %v2416_v63 = vpop.f32.mrb[60].mxu0 }
 0xa2d   : > { %v2417_v26 = vadd.f32 %v2870_v18, %v2416_v63  ;;  %v3224_v23 = vpop.f32.mrb[61].mxu0 }
 0xa2e   : > { %v2419_v32 = vpop.f32.mrb[62].mxu0 }
 0xa2f   : > { %v2445_v44 = vmul.f32 0.70710677, %v2417_v26  ;;  %v2420_v5 = vadd.f32 %v2870_v18, %v2419_v32  ;;  %v3225_v43 = vpop.f32.mrb[63].mxu0  ;;  %v2439_v11 = vmul.f32 0.5, %v2417_v26 }
 0xa31   : > { %3675 = verf.f32 %v2445_v44  ;;  %v2446_v33 = vmul.f32 0.70710677, %v2420_v5  ;;  %v2440_v35 = vmul.f32 0.5, %v2420_v5 }
 0xa33   : > { %3677 = verf.f32 %v2446_v33 }
 0xa36   : > { %v2424_v38 = vpop.f32.mrb[64].mxu0 }
 0xa37   : > { %v2425_v10 = vadd.f32 %v2870_v18, %v2424_v38  ;;  %v3228_v37 = vpop.f32.mrb[65].mxu0 }
 0xa38   : > { %v2427_v4 = vpop.f32.mrb[66].mxu0 }
 0xa39   : > { %v2447_v59 = vmul.f32 0.70710677, %v2425_v10  ;;  %v2428_v62 = vadd.f32 %v2870_v18, %v2427_v4  ;;  %v3229_v29 = vpop.f32.mrb[67].mxu0  ;;  %v2441_v9 = vmul.f32 0.5, %v2425_v10 }
 0xa3b   : > { %v3676_v42 = vpop.eup %3675  ;;  %3679 = verf.f32 %v2447_v59  ;;  %v2448_v54 = vmul.f32 0.70710677, %v2428_v62  ;;  %v2442_v60 = vmul.f32 0.5, %v2428_v62 }
 0xa3c   : > { %v2457_v15 = vadd.f32 1.0, %v3676_v42 }
 0xa3d   : > { %v3678_v24 = vpop.eup %3677  ;;  %3681 = verf.f32 %v2448_v54 }
 0xa3e   : > { %v2458_v55 = vadd.f32 1.0, %v3678_v24  ;;  %v2432_v50 = vpop.f32.mrb[68].mxu0  ;;  %v2463_v25 = vmul.f32 %v2457_v15, %v2439_v11 }
 0xa3f   : > { %v2433_v49 = vadd.f32 %v2870_v18, %v2432_v50  ;;  %v3232_v46 = vpop.f32.mrb[69].mxu0 }
 0xa40   : > { %v2464_v28 = vmul.f32 %v2458_v55, %v2440_v35  ;;  %v2435_v58 = vpop.f32.mrb[70].mxu0 }
 0xa41   : > { %v2449_v52 = vmul.f32 0.70710677, %v2433_v49  ;;  %v2436_v6 = vadd.f32 %v2870_v18, %v2435_v58  ;;  %v3233_v51 = vpop.f32.mrb[71].mxu0  ;;  %v2443_v61 = vmul.f32 0.5, %v2433_v49 }
 0xa42   : > { %v2469_v47 = vpack.c.bf16 %v2464_v28, %v2463_v25  ;;  %v2887_v51 = vld [vmem:[%s4846_s16] ss:$0 sm:$0xff] (%p193_p0)  ;;  %s2748_s16 = sshll.u32 (%p193_p0), %s3781_s15, 4  ;;  %s2749_s16 = int_to_ptr.vmem [resolvable:$true] %s2748_s16 }
 0xa43   : > { %3683 = verf.f32 %v2449_v52  ;;  %v2450_v27 = vmul.f32 0.70710677, %v2436_v6  ;;  %v2444_v34 = vmul.f32 0.5, %v2436_v6  ;;  %p3696_p2 = scmp.lt.s32.totalorder (%p193_p0), %s2749_s16, %s2749_s16 }
 0xa44   : > { %3251 = vmatmul.mubr.bf16.vlgmr.msra.gmra.mrb[52].mxu1 %v2469_v47 }
 0xa45   : > { %v3680_v17 = vpop.eup %3679  ;;  %3685 = verf.f32 %v2450_v27  ;;  %3254 = vmatprep.mubr.msk.bf16.mxu1 %vm3774_vm4, %v3773_v3 }
 0xa46   : > { %v2459_v21 = vadd.f32 1.0, %v3680_v17  ;;  %v2888_v17 = vld [vmem:[%s4847_s17] ss:$0 sm:$0xff] (%p193_p0)  ;;  %s3691_s17 = scalar_lea.vmem (%p193_p0), %s2749_s16, 32 }
 0xa47   : > { %v3682_v0 = vpop.eup %3681  ;;  %p3692_p1 = scmp.ne.s32.totalorder (%p193_p0), %s2749_s16, %s3691_s17  ;;  %p3697_p3 = scmp.lt.s32.totalorder (%p193_p0), %s3691_s17, %s3691_s17 }
 0xa48   : > { %v2460_v2 = vadd.f32 1.0, %v3682_v0  ;;  %v2465_v7 = vmul.f32 %v2459_v21, %v2441_v9 }
 0xa49   :  { %p3698_p4 = por (%p193_p0), %p3697_p3, %p3696_p2 }
 0xa4a   : > { %v2466_v36 = vmul.f32 %v2460_v2, %v2442_v60 }
 0xa4b   :  { %p3699_p5 = pnand (%p193_p0), %p3698_p4, %p3692_p1 }
 0xa4c   : > { %v2470_v40 = vpack.c.bf16 %v2466_v36, %v2465_v7 }
 0xa4d   : > { %v3684_v30 = vpop.eup %3683 }
 0xa4e   : > { %v2461_v12 = vadd.f32 1.0, %v3684_v30  ;;  %3255 = vmatmul.mubr.bf16.gmra.mrb[56].mxu1 %v2470_v40 }
 0xa4f   : > { %v3686_v39 = vpop.eup %3685  ;;  %3258 = vmatprep.mubr.msk.bf16.mxu1 %vm3774_vm4, %v3773_v3 }
 0xa50   : > { %v2462_v31 = vadd.f32 1.0, %v3686_v39  ;;  %v2467_v56 = vmul.f32 %v2461_v12, %v2443_v61  ;;  %v2889_v61 = vld [vmem:[%s4849_s19] ss:$0 sm:$0xff] (%p193_p0) }
 0xa52   : > { %v2468_v13 = vmul.f32 %v2462_v31, %v2444_v34 }
 0xa54   : > { %v2471_v19 = vpack.c.bf16 %v2468_v13, %v2467_v56 }
 0xa56   : > { %3259 = vmatmul.mubr.bf16.gmra.mrb[60].mxu1 %v2471_v19 }
 0xb17   : > { %v2581_v57 = vpop.f32.mrb[52].mxu1 }
 0xb18   : > { %v2582_v41 = vadd.f32 %v2878_v53, %v2581_v57  ;;  %v3252_v18 = vpop.f32.mrb[53].mxu1 }
 0xb19   : > { %v2584_v63 = vpop.f32.mrb[54].mxu1 }
 0xb1a   : > { %v2604_v26 = vadd.f32 %v2582_v41, %v4656_v45   ;;  %v2585_v23 = vadd.f32 %v2878_v53, %v2584_v63  ;;  %v3253_v3 = vpop.f32.mrb[55].mxu1 }
 0xb1c   : > { %v2605_v32 = vadd.f32 %v2585_v23, %v4659_v48  }
 0xb21   : > { %v2589_v44 = vpop.f32.mrb[56].mxu1 }
 0xb22   : > { %v2590_v5 = vadd.f32 %v2878_v53, %v2589_v44  ;;  %v3256_v43 = vpop.f32.mrb[57].mxu1 }
 0xb23   : > { %v2592_v33 = vpop.f32.mrb[58].mxu1 }
 0xb24   : > { %v2606_v38 = vadd.f32 %v2590_v5, %v4666_v16   ;;  %v2593_v10 = vadd.f32 %v2878_v53, %v2592_v33  ;;  %v3257_v37 = vpop.f32.mrb[59].mxu1  ;;  %v4867_v16 = vmov %v2604_v26 }
 0xb26   : > { %v2607_v4 = vadd.f32 %v2593_v10, %v4669_v22   ;;  %v4866_v22 = vmov %v2605_v32 }
 0xb28   :  { %195 = sbr.rel (!%p193_p0) target bundleno = 247 (0xf7), region = 120  ;;  %v2614_v48 = vrot.slane (%p193_p0), %v2607_v4, 7 }
 0xb29   : > { %v2597_v59 = vpop.f32.mrb[60].mxu1 }
 0xb2a   : > { %v2598_v62 = vadd.f32 %v2878_v53, %v2597_v59  ;;  %v3260_v29 = vpop.f32.mrb[61].mxu1  ;;  %v2616_v16 = vsel (%p193_p0), %vm2615_vm9, %v2614_v48, %v2604_v26 }
 0xb2b   : > { %v2600_v42 = vpop.f32.mrb[62].mxu1  ;;  %v2619_v15 = vsel (%p193_p0), %vm2618_vm10, %v2616_v16, 0.0 }
 0xb2c   : > { %v2608_v25 = vadd.f32 %v2598_v62, %v4676_v14   ;;  %v2601_v45 = vadd.f32 %v2878_v53, %v2600_v42  ;;  %v3261_v54 = vpop.f32.mrb[63].mxu1  ;;  %v4865_v14 = vmov %v2606_v38  ;;  %2620 = vadd.xlane.f32.xlu0 (%p193_p0), %v2619_v15 }
 0xb2d   :  { %v3687_v14 = vld [vmem:[%s4848_s18] sm:$0xff] (%p193_p0)  }
 0xb2e   : > { %v2609_v28 = vadd.f32 %v2601_v45, %v4679_v20   ;;  %v4864_v20 = vmov %v2607_v4  ;;  %3263 = vmatpush3.bf16.msra.mxu0 (%p193_p0), %v3687_v14 }
 0xb2f   :  { %v3688_v20 = vld [vmem:[%s4848_s18 + $0x8] sm:$0xff]   ;;  %3264 = vmatprep.subr.bf16.mxu0 %v3771_v1 }
 0xb32   :  { %3265 = vmatpush3.bf16.msra.mxu0 %v3688_v20 }
 0xbb9   :  { %v2621_v24 = vpop.xlane.xlu0 %2620 }
 0xbba   :  { %v2623_v11 = vmul.f32 0.03125, %v2621_v24 }
 0xbbc   :  { %v2625_v35 = vrot.slane %v2623_v11, 1  ;;  %v2628_v55 = vsub.f32 %v2604_v26, %v2623_v11 }
 0xbbe   :  { %v2629_v50 = vsub.f32 %v2607_v4, %v2625_v35  ;;  %v2630_v46 = vmul.f32 %v2628_v55, %v2628_v55 }
 0xbc0   :  { %v2631_v49 = vmul.f32 %v2629_v50, %v2629_v50 }
 0xbc2   :  { %v2634_v58 = vrot.slane %v2631_v49, 7 }
 0xbc4   :  { %v2635_v8 = vsel %vm2615_vm9, %v2634_v58, %v2630_v46 }
 0xbc5   :  { %v2637_v22 = vsel %vm2618_vm10, %v2635_v8, 0.0 }
 0xbc6   :  { %2638 = vadd.xlane.f32.xlu0 %v2637_v22 }
 0xc53   :  { %v2639_v25 = vpop.xlane.xlu0 %2638 }
 0xc54   :  { %v2640_v28 = vmul.f32 0.03125, %v2639_v25 }
 0xc56   :  { %v2641_v52 = vadd.f32 1e-05, %v2640_v28 }
 0xc58   :  { %3689 = vrsqrt.f32 %v2641_v52 }
 0xc62   :  { %v3690_v6 = vpop.eup %3689 }
 0xc63   :  { %v2644_v47 = vrot.slane %v3690_v6, 1  ;;  %v2647_v27 = vmul.f32 %v3690_v6, %v2628_v55 }
 0xc65   :  { %v2648_v21 = vmul.f32 %v2644_v47, %v2629_v50  ;;  %v2655_v0 = vmul.f32 %v2887_v51, %v2647_v27 }
 0xc67   :  { %v2656_v9 = vmul.f32 %v2887_v51, %v2648_v21  ;;  %v2663_v1 = vadd.f32 %v2888_v17, %v2655_v0 }
 0xc69   :  { %v2664_v60 = vadd.f32 %v2888_v17, %v2656_v9  ;;  %v2665_v2 = vpack.c.bf16 %v2663_v1, %v2663_v1 }
 0xc6b   :  { %v2666_v7 = vpack.c.bf16 %v2664_v60, %v2664_v60  ;;  %v2680_v40 = vunpack.c.l.b16 %v2665_v2 }
 0xc6d   :  { %v2681_v36 = vunpack.c.l.b16 %v2666_v7 }
 0xc6f   :  { %v2682_v30 = vrot.slane %v2681_v36, 7 }
 0xc71   :  { %v2683_v12 = vsel %vm2615_vm9, %v2682_v30, %v2680_v40 }
 0xc72   :  { %v2684_v39 = vpack.c.b16 %v2683_v12, %v2683_v12 }
 0xc74   :  { %3267 = vmatmul.mubr.msk.bf16.vlgmr.msra.gmra.mrb[0].mxu0 %vm207_vm3, %v2684_v39 }
 0xd47   :  { %v2735_v34 = vpop.f32.mrb[0].mxu0 }
 0xd48   :  { %v2736_v31 = vadd.f32 %v2889_v61, %v2735_v34  ;;  %v3268_v56 = vpop.f32.mrb[1].mxu0 }
 0xd49   :  { %v2738_v13 = vpop.f32.mrb[2].mxu0 }
 0xd4a   :  { %2741 = vst [vmem:[#allocation2] sm:$0x3] %v2736_v31  ;;  %v3269_v19 = vpop.f32.mrb[3].mxu0 }
 0xd4b   :  { %3702 = shalt.err (!%p3699_p5)
}
 0xd4c   :  { %s3703_s19 = scalar_lea.hbm %s4850_s20, 32 }
 0xd4d   :  { %p3704_p6 = scmp.ne.s32.totalorder %s4850_s20, %s3703_s19  ;;  %p3707_p7 = scmp.lt.u32.totalorder %s3703_s19, %s4850_s20 }
 0xd4f   :  { %p3709_p8 = pnand %p3707_p7, %p3704_p6 }
 0xd51   :  { %3712 = shalt.err (!%p3709_p8)
}
 0xd52   :  { %2751 = dma.vmem_to_hbm [thread:$0]  %s2749_s16, 32, %s4850_s20, [#allocation3]  }
 0xd53   :  { %3741 = dma.done.wait [#allocation3], 32  }
 0xd54   :  { %3742 = vsyncadd [#allocation3], 4294967264 }
 0xd55   :  { %2755 = vsyncpa [#allocation3], 1 }

</bundles_post_ra>
